<compile_context>
chip_gen: v7x
topology: tpu7x:2x2x1
jax: 0.10.0
libtpu: 0.0.40
codegen_flags: <defaults>
</compile_context>

<pallas_src>
import math
import functools

import jax
import jax.numpy as jnp
from jax import lax
from jax.experimental import pallas as pl
from jax.experimental.pallas import tpu as pltpu


def _vmem_limit_bytes():
    # Leave headroom for Mosaic internal scratch / 2 TCs: ~75% of physical,
    # capped at 96 MiB (v5e/v6e have 128 MiB; v7x has 64 MiB -> 48 MiB).
    try:
        cap = pltpu.get_tpu_info().vmem_capacity_bytes
        return int(min(cap * 3 // 4, 96 * 1024 * 1024))
    except Exception:
        return 48 * 1024 * 1024


_VMEM_LIMIT = _vmem_limit_bytes()


def _pick_tile(dim, target, align):
    """Full dim if small; otherwise the largest `align`-multiple divisor <= target."""
    if dim <= target:
        return dim
    t = (target // align) * align
    while t >= align:
        if dim % t == 0:
            return t
        t -= align
    # TODO(synk): fallback uses the whole dim; for non-128-multiple vocab sizes
    # (e.g. 50257) pad the dim to a 128 multiple instead of blowing up VMEM.
    return dim


# ------------------- fused RMSNorm + matmul (qkv / lm_head) -------------------

def _norm_mm_kernel(x_ref, nw_ref, w_ref, o_ref, *, eps):
    # Matches RMS_Norm.forward (fp32 math): w * x / (sqrt(mean(x^2)) + eps),
    # then y = xn @ W on the MXU (bf16 in, f32 accumulate).
    x = x_ref[...].astype(jnp.float32)                          # (tm, C)
    rms = jnp.sqrt(jnp.mean(x * x, axis=-1, keepdims=True))
    xn = (nw_ref[...] * x / (rms + eps)).astype(jnp.bfloat16)
    o_ref[...] = jnp.dot(xn, w_ref[...],
                         preferred_element_type=jnp.float32).astype(o_ref.dtype)


def norm_matmul(x2d, norm_w, w_bf16, *, eps=1e-6, out_dtype=jnp.bfloat16,
                tm_target=512, tn_target=512):
    """(rmsnorm(x) * norm_w) @ W.  x2d is the f32 residual stream (M, C)."""
    M, C = x2d.shape
    Cw, N = w_bf16.shape
    assert Cw == C
    tm = _pick_tile(M, tm_target, 8)
    tn = _pick_tile(N, tn_target, 128)
    grid = (M // tm, N // tn)
    cost = pl.CostEstimate(
        flops=int(2 * M * N * C + 8 * M * C), transcendentals=0,
        bytes_accessed=int(4 * M * C + 2 * C * N + jnp.dtype(out_dtype).itemsize * M * N))
    return pl.pallas_call(
        functools.partial(_norm_mm_kernel, eps=eps),
        out_shape=jax.ShapeDtypeStruct((M, N), out_dtype),
        grid=grid,
        in_specs=[pl.BlockSpec((tm, C), lambda i, j: (i, 0)),
                  pl.BlockSpec((1, C), lambda i, j: (0, 0)),
                  pl.BlockSpec((C, tn), lambda i, j: (0, j))],
        out_specs=pl.BlockSpec((tm, tn), lambda i, j: (i, j)),
        compiler_params=pltpu.CompilerParams(
            dimension_semantics=("parallel", "parallel"),
            vmem_limit_bytes=_VMEM_LIMIT),
        cost_estimate=cost,
    )(x2d, norm_w.reshape(1, C), w_bf16)


# ---------------- fused RMSNorm + gated-MLP first stage -----------------------

def _norm_gated_mlp_kernel(x_ref, nw_ref, wg_ref, wu_ref, o_ref, *, eps):
    x = x_ref[...].astype(jnp.float32)
    rms = jnp.sqrt(jnp.mean(x * x, axis=-1, keepdims=True))
    xn = (nw_ref[...] * x / (rms + eps)).astype(jnp.bfloat16)
    g = jnp.dot(xn, wg_ref[...], preferred_element_type=jnp.float32)
    u = jnp.dot(xn, wu_ref[...], preferred_element_type=jnp.float32)
    o_ref[...] = (jnp.maximum(g, 0.0) * u).astype(o_ref.dtype)


def norm_gated_mlp(x2d, norm_w, wg_bf16, wu_bf16, *, eps=1e-6,
                   out_dtype=jnp.bfloat16, tm_target=512, tn_target=512):
    """relu(rmsnorm(x) @ Wg) * (rmsnorm(x) @ Wu)."""
    M, C = x2d.shape
    _, N = wg_bf16.shape
    tm = _pick_tile(M, tm_target, 8)
    tn = _pick_tile(N, tn_target, 128)
    grid = (M // tm, N // tn)
    cost = pl.CostEstimate(
        flops=int(4 * M * N * C + 8 * M * C), transcendentals=0,
        bytes_accessed=int(4 * M * C + 4 * C * N + jnp.dtype(out_dtype).itemsize * M * N))
    return pl.pallas_call(
        functools.partial(_norm_gated_mlp_kernel, eps=eps),
        out_shape=jax.ShapeDtypeStruct((M, N), out_dtype),
        grid=grid,
        in_specs=[pl.BlockSpec((tm, C), lambda i, j: (i, 0)),
                  pl.BlockSpec((1, C), lambda i, j: (0, 0)),
                  pl.BlockSpec((C, tn), lambda i, j: (0, j)),
                  pl.BlockSpec((C, tn), lambda i, j: (0, j))],
        out_specs=pl.BlockSpec((tm, tn), lambda i, j: (i, j)),
        compiler_params=pltpu.CompilerParams(
            dimension_semantics=("parallel", "parallel"),
            vmem_limit_bytes=_VMEM_LIMIT),
        cost_estimate=cost,
    )(x2d, norm_w.reshape(1, C), wg_bf16, wu_bf16)


# --------------------- matmul + fused residual add ---------------------------

def _mm_res_kernel(x_ref, w_ref, r_ref, o_ref):
    # Full-K path: no accumulator revisit, residual add fused in the epilogue.
    o_ref[...] = (jnp.dot(x_ref[...], w_ref[...], preferred_element_type=jnp.float32)
                  + r_ref[...].astype(jnp.float32)).astype(o_ref.dtype)


def _mm_res_acc_kernel(x_ref, w_ref, r_ref, o_ref, acc_ref):
    # K-split path (large K): f32 accumulator in VMEM scratch.
    @pl.when(pl.program_id(2) == 0)
    def _():
        acc_ref[...] = jnp.zeros_like(acc_ref)

    acc_ref[...] += jnp.dot(x_ref[...], w_ref[...], preferred_element_type=jnp.float32)

    @pl.when(pl.program_id(2) == pl.num_programs(2) - 1)
    def _():
        o_ref[...] = (acc_ref[...] + r_ref[...].astype(jnp.float32)).astype(o_ref.dtype)


def matmul_residual(x_bf16, w_bf16, residual, *, out_dtype=jnp.float32,
                    tm_target=512, tn_target=512, tk_full_max=4096, tk_target=1024):
    """y = x @ W + residual.  x/W are bf16, residual/output f32."""
    M, K = x_bf16.shape
    Kw, N = w_bf16.shape
    assert Kw == K
    tm = _pick_tile(M, tm_target, 8)
    tn = _pick_tile(N, tn_target, 128)
    cost = pl.CostEstimate(
        flops=int(2 * M * N * K), transcendentals=0,
        bytes_accessed=int(2 * (M * K + K * N) + 4 * M * N
                           + jnp.dtype(out_dtype).itemsize * M * N))

    if K <= tk_full_max:
        grid = (M // tm, N // tn)
        return pl.pallas_call(
            _mm_res_kernel,
            out_shape=jax.ShapeDtypeStruct((M, N), out_dtype),
            grid=grid,
            in_specs=[pl.BlockSpec((tm, K), lambda i, j: (i, 0)),
                      pl.BlockSpec((K, tn), lambda i, j: (0, j)),
                      pl.BlockSpec((tm, tn), lambda i, j: (i, j))],
            out_specs=pl.BlockSpec((tm, tn), lambda i, j: (i, j)),
            compiler_params=pltpu.CompilerParams(
                dimension_semantics=("parallel", "parallel"),
                vmem_limit_bytes=_VMEM_LIMIT),
            cost_estimate=cost,
        )(x_bf16, w_bf16, residual)

    tk = _pick_tile(K, tk_target, 128)
    grid = (M // tm, N // tn, K // tk)
    return pl.pallas_call(
        _mm_res_acc_kernel,
        out_shape=jax.ShapeDtypeStruct((M, N), out_dtype),
        grid=grid,
        in_specs=[pl.BlockSpec((tm, tk), lambda i, j, k: (i, k)),
                  pl.BlockSpec((tk, tn), lambda i, j, k: (k, j)),
                  pl.BlockSpec((tm, tn), lambda i, j, k: (i, j))],
        out_specs=pl.BlockSpec((tm, tn), lambda i, j, k: (i, j)),
        scratch_shapes=[pltpu.VMEM((tm, tn), jnp.float32)],
        compiler_params=pltpu.CompilerParams(
            dimension_semantics=("parallel", "parallel", "arbitrary"),
            vmem_limit_bytes=_VMEM_LIMIT),
        cost_estimate=cost,
    )(x_bf16, w_bf16, residual)


# ---------------------------- flash attention -------------------------------

def _flash_attn_kernel(q_ref, k_ref, v_ref, o_ref, m_sc, l_sc, acc_sc, *, scale):
    qi = pl.program_id(1)
    ki = pl.program_id(2)

    @pl.when(ki == 0)
    def _():
        m_sc[...] = jnp.full(m_sc.shape, -jnp.inf, jnp.float32)
        l_sc[...] = jnp.zeros(l_sc.shape, jnp.float32)
        acc_sc[...] = jnp.zeros(acc_sc.shape, jnp.float32)

    def step(masked):
        q = q_ref[0]          # (H, bt, hs) bf16 -- all heads batched per step
        k = k_ref[0]
        v = v_ref[0]
        s = jnp.einsum('hqd,hkd->hqk', q, k,
                       preferred_element_type=jnp.float32) * scale
        if masked:
            # Only the diagonal block needs the causal mask (ki == qi, so the
            # block offsets cancel and local iotas suffice).
            q_pos = lax.broadcasted_iota(jnp.int32, s.shape, 1)
            k_pos = lax.broadcasted_iota(jnp.int32, s.shape, 2)
            s = jnp.where(k_pos <= q_pos, s, -1e30)
        m_prev = m_sc[...]
        m_new = jnp.maximum(m_prev, jnp.max(s, axis=-1, keepdims=True))
        alpha = jnp.exp(m_prev - m_new)
        p = jnp.exp(s - m_new)
        l_sc[...] = alpha * l_sc[...] + jnp.sum(p, axis=-1, keepdims=True)
        acc_sc[...] = alpha * acc_sc[...] + jnp.einsum(
            'hqk,hkd->hqd', p.astype(v.dtype), v,
            preferred_element_type=jnp.float32)
        m_sc[...] = m_new

    @pl.when(ki < qi)      # interior causal block: no mask needed
    def _():
        step(False)

    @pl.when(ki == qi)     # diagonal block: masked
    def _():
        step(True)

    # Blocks with ki > qi are fully masked: no compute, and their K/V DMAs are
    # elided by the clamped index_map in the wrapper.

    @pl.when(ki == pl.num_programs(2) - 1)
    def _():
        o_ref[0] = (acc_sc[...] * pl.reciprocal(l_sc[...], approx=True)
                    ).astype(o_ref.dtype)


def flash_attention(q, k, v, out_dtype=jnp.bfloat16):
    """q,k,v: (B, H, T, hs) bf16 -> (B, H, T, hs); causal, scale=1/sqrt(hs)."""
    B, H, T, hs = q.shape
    scale = 1.0 / math.sqrt(hs)
    bt = _pick_tile(T, 256, 8)
    n_t = T // bt
    q_spec = pl.BlockSpec((1, H, bt, hs), lambda b, qi, ki: (b, 0, qi, 0))
    # Clamp kv block index to the diagonal: above-diagonal steps re-use the
    # previous block index so the pipeline never fetches masked K/V blocks.
    kv_spec = pl.BlockSpec((1, H, bt, hs),
                           lambda b, qi, ki: (b, 0, jnp.minimum(ki, qi), 0))
    return pl.pallas_call(
        functools.partial(_flash_attn_kernel, scale=scale),
        out_shape=jax.ShapeDtypeStruct((B, H, T, hs), out_dtype),
        grid=(B, n_t, n_t),
        in_specs=[q_spec, kv_spec, kv_spec],
        out_specs=q_spec,
        scratch_shapes=[pltpu.VMEM((H, bt, 1), jnp.float32),
                        pltpu.VMEM((H, bt, 1), jnp.float32),
                        pltpu.VMEM((H, bt, hs), jnp.float32)],
        compiler_params=pltpu.CompilerParams(
            dimension_semantics=("parallel", "parallel", "arbitrary"),
            vmem_limit_bytes=_VMEM_LIMIT),
    )(q, k, v)


# ------------------------------- model wrapper -------------------------------

def gpt_forward(params, idx, n_head):
    B, T = idx.shape
    C = params['wte'].shape[1]
    hs = C // n_head
    M = B * T

    tok = params['wte'][idx]                     # embedding gather (XLA glue)
    pos = params['wpe'][jnp.arange(T)]
    x = (tok + pos[None, :, :]).reshape(M, C)    # f32 residual stream
    # TODO(synk): dropout is identity (p=0.0 / eval mode) -- not implemented as a kernel.

    for lyr in params['layers']:
        # ---- attention sub-block: x = x + c_proj(attn(norm(x))) ----
        qkv = norm_matmul(x, lyr['norm_w'], lyr['qkv_w'])            # (M, 3C) bf16
        # TODO(synk): head split/merge left as XLA reshape/transpose glue; a
        # head-major matmul output layout would remove these activation round
        # trips but needs >=128-lane head handling for a lane-dense store.
        qkv = qkv.reshape(B, T, 3, n_head, hs)
        q = qkv[:, :, 0].transpose(0, 2, 1, 3)
        k = qkv[:, :, 1].transpose(0, 2, 1, 3)
        v = qkv[:, :, 2].transpose(0, 2, 1, 3)
        y = flash_attention(q, k, v)                                 # (B,H,T,hs) bf16
        y2d = y.transpose(0, 2, 1, 3).reshape(M, C)
        x = matmul_residual(y2d, lyr['c_proj_w'], x)                 # f32 (M, C)

        # ---- MLP sub-block (Block reuses the same norm weight) ----
        h = norm_gated_mlp(x, lyr['norm_w'], lyr['gate_w'], lyr['up_w'])  # (M,4C) bf16
        x = matmul_residual(h, lyr['down_w'], x)                     # f32 (M, C)

    # weight tying: lm_head.weight == wte -> logits = norm(x) @ wte.T, using the
    # bf16 pre-transposed copy prepared once outside the forward.
    logits = norm_matmul(x, params['norm_w'], params['wte_t'],
                         out_dtype=jnp.float32)
    return logits.reshape(B, T, -1), None


# --------------------------- parameter construction --------------------------

def init_params(key, vocab_size, block_size, n_embed, n_layer):
    std = 0.02
    cproj_std = 0.02 / math.sqrt(2 * n_layer)
    keys = jax.random.split(key, 2 + 5 * n_layer)
    ki = iter(range(len(keys)))
    params = {
        'wte': std * jax.random.normal(keys[next(ki)], (vocab_size, n_embed), jnp.float32),
        'wpe': std * jax.random.normal(keys[next(ki)], (block_size, n_embed), jnp.float32),
        'norm_w': jnp.ones((n_embed,), jnp.float32),
        'layers': [],
    }
    for _ in range(n_layer):
        lyr = {
            'norm_w': jnp.ones((n_embed,), jnp.float32),
            'qkv_w': std * jax.random.normal(keys[next(ki)], (n_embed, 3 * n_embed), jnp.float32),
            'c_proj_w': cproj_std * jax.random.normal(keys[next(ki)], (n_embed, n_embed), jnp.float32),
            'gate_w': std * jax.random.normal(keys[next(ki)], (n_embed, 4 * n_embed), jnp.float32),
            'up_w': std * jax.random.normal(keys[next(ki)], (4 * n_embed // 4, 4 * n_embed), jnp.float32),
            'down_w': cproj_std * jax.random.normal(keys[next(ki)], (4 * n_embed, n_embed), jnp.float32),
        }
        params['layers'].append(lyr)
    return params


def prepare_params(params):
    """One-time bf16 weight copies (avoids per-call f32->bf16 casts in the
    forward) + pre-transposed bf16 wte for the tied lm_head."""
    bf = jnp.bfloat16
    prepped = {
        'wte': params['wte'],                       # f32 for the embedding gather
        'wpe': params['wpe'],
        'norm_w': params['norm_w'],
        'wte_t': params['wte'].T.astype(bf),        # (C, V) bf16 for lm_head
        'layers': [],
    }
    for lyr in params['layers']:
        prepped['layers'].append({
            'norm_w': lyr['norm_w'],
            'qkv_w': lyr['qkv_w'].astype(bf),
            'c_proj_w': lyr['c_proj_w'].astype(bf),
            'gate_w': lyr['gate_w'].astype(bf),
            'up_w': lyr['up_w'].astype(bf),
            'down_w': lyr['down_w'].astype(bf),
        })
    return prepped


# ------------------------------ pure-JAX reference ---------------------------

def ref_forward(params, idx, n_head):
    def rn(x, w, eps=1e-6):
        x = x.astype(jnp.float32)
        return w * x / (jnp.sqrt(jnp.mean(x * x, -1, keepdims=True)) + eps)

    B, T = idx.shape
    C = params['wte'].shape[1]
    hs = C // n_head
    x = params['wte'][idx] + params['wpe'][jnp.arange(T)][None]
    for lyr in params['layers']:
        xn = rn(x, lyr['norm_w'])
        qkv = xn @ lyr['qkv_w']
        q, k, v = jnp.split(qkv, 3, axis=2)
        q = q.reshape(B, T, n_head, hs).transpose(0, 2, 1, 3)
        k = k.reshape(B, T, n_head, hs).transpose(0, 2, 1, 3)
        v = v.reshape(B, T, n_head, hs).transpose(0, 2, 1, 3)
        s = jnp.einsum('bhqd,bhkd->bhqk', q, k) / math.sqrt(hs)
        mask = jnp.tril(jnp.ones((T, T), bool))
        s = jnp.where(mask[None, None], s, -jnp.inf)
        p = jax.nn.softmax(s, axis=-1)
        y = jnp.einsum('bhqk,bhkd->bhqd', p, v).transpose(0, 2, 1, 3).reshape(B, T, C)
        x = x + y @ lyr['c_proj_w']
        xn = rn(x, lyr['norm_w'])
        h = jnp.maximum(xn @ lyr['gate_w'], 0.0) * (xn @ lyr['up_w'])
        x = x + h @ lyr['down_w']
    x = rn(x, params['norm_w'])
    return x @ params['wte'].T


# ------------------------------------ main -----------------------------------

if __name__ == "__main__":
    # small config consistent with the module
    vocab_size, block_size, n_embed, n_head, n_layer = 64, 16, 32, 4, 2
    B, T = 2, 8

    key = jax.random.PRNGKey(0)
    pkey, ikey = jax.random.split(key)
    params = init_params(pkey, vocab_size, block_size, n_embed, n_layer)
    idx = jax.random.randint(ikey, (B, T), 0, vocab_size, dtype=jnp.int32)

    kparams = prepare_params(params)     # one-time bf16 weight prep (not per call)

    fwd = jax.jit(gpt_forward, static_argnums=2)
    logits, loss = fwd(kparams, idx, n_head)
    logits = jax.block_until_ready(logits)

    ref = ref_forward(params, idx, n_head)
    assert logits.shape == (B, T, vocab_size)
    # bf16 matmul inputs (f32 accumulation) vs the f32 reference -> loose-ish tolerance.
    assert jnp.allclose(logits, ref, atol=2e-2, rtol=2e-2), "mismatch vs reference"
    print("KERNEL_OK")
</pallas_src>

<mosaic_0001>
module attributes {stable_mosaic.version = 11 : i64} {
  func.func @_norm_mm_kernel(%arg0: i32, %arg1: i32, %arg2: memref<16x32xf32, #tpu.memory_space<vmem>>, %arg3: memref<1x32xf32, #tpu.memory_space<vmem>>, %arg4: memref<32x96xbf16, #tpu.memory_space<vmem>>, %arg5: memref<16x96xbf16, #tpu.memory_space<vmem>>) attributes {dimension_semantics = [#tpu.dimension_semantics<parallel>, #tpu.dimension_semantics<parallel>], iteration_bounds = array<i64: 1, 1>, scalar_prefetch = 0 : i64, scratch_operands = 0 : i64, tpu.core_type = #tpu.core_type<tc>, window_params = [{transform_indices = @transform_0, window_bounds = array<i64: 16, 32>}, {pipeline_mode = #tpu.pipeline_mode<synchronous>, transform_indices = @transform_1, window_bounds = array<i64: 1, 32>}, {transform_indices = @transform_2, window_bounds = array<i64: 32, 96>}, {transform_indices = @transform_3, window_bounds = array<i64: 16, 96>}]} {
    %c0 = arith.constant 0 : index
    %c0_0 = arith.constant 0 : index
    %0 = vector.load %arg2[%c0, %c0_0] : memref<16x32xf32, #tpu.memory_space<vmem>>, vector<16x32xf32>
    %1 = arith.mulf %0, %0 : vector<16x32xf32>
    %cst = arith.constant dense<0.000000e+00> : vector<16xf32>
    %2 = vector.multi_reduction <add>, %1, %cst [1] : vector<16x32xf32> to vector<16xf32>
    %3 = vector.shape_cast %2 : vector<16xf32> to vector<16x1xf32>
    %cst_1 = arith.constant 3.200000e+01 : f32
    %4 = vector.broadcast %cst_1 : f32 to vector<16x1xf32>
    %5 = arith.divf %3, %4 : vector<16x1xf32>
    %6 = math.sqrt %5 : vector<16x1xf32>
    %c0_2 = arith.constant 0 : index
    %c0_3 = arith.constant 0 : index
    %7 = vector.load %arg3[%c0_2, %c0_3] : memref<1x32xf32, #tpu.memory_space<vmem>>, vector<1x32xf32>
    %8 = vector.broadcast %7 : vector<1x32xf32> to vector<16x32xf32>
    %9 = arith.mulf %8, %0 : vector<16x32xf32>
    %cst_4 = arith.constant 9.99999997E-7 : f32
    %10 = vector.broadcast %cst_4 : f32 to vector<16x1xf32>
    %11 = arith.addf %6, %10 : vector<16x1xf32>
    %12 = vector.broadcast %11 : vector<16x1xf32> to vector<16x32xf32>
    %13 = arith.divf %9, %12 : vector<16x32xf32>
    %14 = arith.truncf %13 : vector<16x32xf32> to vector<16x32xbf16>
    %c0_5 = arith.constant 0 : index
    %c0_6 = arith.constant 0 : index
    %15 = vector.load %arg4[%c0_5, %c0_6] : memref<32x96xbf16, #tpu.memory_space<vmem>>, vector<32x96xbf16>
    %cst_7 = arith.constant dense<0.000000e+00> : vector<16x96xf32>
    %16 = tpu.matmul %14, %15, %cst_7 {dimension_numbers = #tpu.dot_dimension_numbers<[1], [0], [0], [1], [0, 0, 1, 1], [], []>} : vector<16x32xbf16>, vector<32x96xbf16>, vector<16x96xf32> -> vector<16x96xf32>
    %17 = arith.truncf %16 : vector<16x96xf32> to vector<16x96xbf16>
    %c0_8 = arith.constant 0 : index
    %c0_9 = arith.constant 0 : index
    %18 = vector.load %arg5[%c0_8, %c0_9] : memref<16x96xbf16, #tpu.memory_space<vmem>>, vector<16x96xbf16>
    tpu.vector_store %arg5[%c0_8, %c0_9], %17 {strides = array<i32>} : memref<16x96xbf16, #tpu.memory_space<vmem>>, vector<16x96xbf16>,
    return
  }
  func.func @transform_0(%arg0: i32, %arg1: i32) -> (i32, i32) {
    %c0_i32 = arith.constant 0 : i32
    %c0_i32_0 = arith.constant 0 : i32
    return %arg0, %c0_i32 : i32, i32
  }
  func.func @transform_1(%arg0: i32, %arg1: i32) -> (i32, i32) {
    %c0_i32 = arith.constant 0 : i32
    %c0_i32_0 = arith.constant 0 : i32
    %c0_i32_1 = arith.constant 0 : i32
    return %c0_i32, %c0_i32_0 : i32, i32
  }
  func.func @transform_2(%arg0: i32, %arg1: i32) -> (i32, i32) {
    %c0_i32 = arith.constant 0 : i32
    %c0_i32_0 = arith.constant 0 : i32
    return %c0_i32, %arg1 : i32, i32
  }
  func.func @transform_3(%arg0: i32, %arg1: i32) -> (i32, i32) {
    %c0_i32 = arith.constant 0 : i32
    return %arg0, %arg1 : i32, i32
  }
}

module attributes {stable_mosaic.version = 11 : i64} {
  func.func @_mm_res_kernel(%arg0: i32, %arg1: i32, %arg2: memref<16x32xbf16, #tpu.memory_space<vmem>>, %arg3: memref<32x32xbf16, #tpu.memory_space<vmem>>, %arg4: memref<16x32xf32, #tpu.memory_space<vmem>>, %arg5: memref<16x32xf32, #tpu.memory_space<vmem>>) attributes {dimension_semantics = [#tpu.dimension_semantics<parallel>, #tpu.dimension_semantics<parallel>], iteration_bounds = array<i64: 1, 1>, scalar_prefetch = 0 : i64, scratch_operands = 0 : i64, tpu.core_type = #tpu.core_type<tc>, window_params = [{transform_indices = @transform_0, window_bounds = array<i64: 16, 32>}, {transform_indices = @transform_1, window_bounds = array<i64: 32, 32>}, {transform_indices = @transform_2, window_bounds = array<i64: 16, 32>}, {transform_indices = @transform_3, window_bounds = array<i64: 16, 32>}]} {
    %c0 = arith.constant 0 : index
    %c0_0 = arith.constant 0 : index
    %0 = vector.load %arg2[%c0, %c0_0] : memref<16x32xbf16, #tpu.memory_space<vmem>>, vector<16x32xbf16>
    %c0_1 = arith.constant 0 : index
    %c0_2 = arith.constant 0 : index
    %1 = vector.load %arg3[%c0_1, %c0_2] : memref<32x32xbf16, #tpu.memory_space<vmem>>, vector<32x32xbf16>
    %cst = arith.constant dense<0.000000e+00> : vector<16x32xf32>
    %2 = tpu.matmul %0, %1, %cst {dimension_numbers = #tpu.dot_dimension_numbers<[1], [0], [0], [1], [0, 0, 1, 1], [], []>} : vector<16x32xbf16>, vector<32x32xbf16>, vector<16x32xf32> -> vector<16x32xf32>
    %c0_3 = arith.constant 0 : index
    %c0_4 = arith.constant 0 : index
    %3 = vector.load %arg4[%c0_3, %c0_4] : memref<16x32xf32, #tpu.memory_space<vmem>>, vector<16x32xf32>
    %4 = arith.addf %2, %3 : vector<16x32xf32>
    %c0_5 = arith.constant 0 : index
    %c0_6 = arith.constant 0 : index
    %5 = vector.load %arg5[%c0_5, %c0_6] : memref<16x32xf32, #tpu.memory_space<vmem>>, vector<16x32xf32>
    tpu.vector_store %arg5[%c0_5, %c0_6], %4 {strides = array<i32>} : memref<16x32xf32, #tpu.memory_space<vmem>>, vector<16x32xf32>,
    return
  }
  func.func @transform_0(%arg0: i32, %arg1: i32) -> (i32, i32) {
    %c0_i32 = arith.constant 0 : i32
    %c0_i32_0 = arith.constant 0 : i32
    return %arg0, %c0_i32 : i32, i32
  }
  func.func @transform_1(%arg0: i32, %arg1: i32) -> (i32, i32) {
    %c0_i32 = arith.constant 0 : i32
    %c0_i32_0 = arith.constant 0 : i32
    return %c0_i32, %arg1 : i32, i32
  }
  func.func @transform_2(%arg0: i32, %arg1: i32) -> (i32, i32) {
    %c0_i32 = arith.constant 0 : i32
    return %arg0, %arg1 : i32, i32
  }
  func.func @transform_3(%arg0: i32, %arg1: i32) -> (i32, i32) {
    %c0_i32 = arith.constant 0 : i32
    return %arg0, %arg1 : i32, i32
  }
}

module attributes {stable_mosaic.version = 11 : i64} {
  func.func @_flash_attn_kernel(%arg0: i32, %arg1: i32, %arg2: i32, %arg3: memref<1x4x8x8xbf16, #tpu.memory_space<vmem>>, %arg4: memref<1x4x8x8xbf16, #tpu.memory_space<vmem>>, %arg5: memref<1x4x8x8xbf16, #tpu.memory_space<vmem>>, %arg6: memref<1x4x8x8xbf16, #tpu.memory_space<vmem>>, %arg7: memref<4x8x1xf32, #tpu.memory_space<vmem>>, %arg8: memref<4x8x1xf32, #tpu.memory_space<vmem>>, %arg9: memref<4x8x8xf32, #tpu.memory_space<vmem>>) attributes {dimension_semantics = [#tpu.dimension_semantics<parallel>, #tpu.dimension_semantics<parallel>, #tpu.dimension_semantics<arbitrary>], iteration_bounds = array<i64: 2, 1, 1>, scalar_prefetch = 0 : i64, scratch_operands = 3 : i64, tpu.core_type = #tpu.core_type<tc>, window_params = [{transform_indices = @transform_0, window_bounds = array<i64: 1, 4, 8, 8>}, {transform_indices = @transform_1, window_bounds = array<i64: 1, 4, 8, 8>}, {transform_indices = @transform_2, window_bounds = array<i64: 1, 4, 8, 8>}, {transform_indices = @transform_3, window_bounds = array<i64: 1, 4, 8, 8>}]} {
    %c0_i32 = arith.constant 0 : i32
    %0 = arith.cmpi eq, %arg2, %c0_i32 : i32
    %1 = arith.extui %0 : i1 to i32
    %c0_i32_0 = arith.constant 0 : i32
    %2 = arith.cmpi ne, %1, %c0_i32_0 : i32
    scf.if %2 {
      %cst = arith.constant 0xFF800000 : f32
      %12 = vector.broadcast %cst : f32 to vector<4x8x1xf32>
      %c0 = arith.constant 0 : index
      %c0_5 = arith.constant 0 : index
      %c0_6 = arith.constant 0 : index
      %13 = vector.load %arg7[%c0, %c0_5, %c0_6] : memref<4x8x1xf32, #tpu.memory_space<vmem>>, vector<4x8x1xf32>
      tpu.vector_store %arg7[%c0, %c0_5, %c0_6], %12 {strides = array<i32>} : memref<4x8x1xf32, #tpu.memory_space<vmem>>, vector<4x8x1xf32>,
      %cst_7 = arith.constant 0.000000e+00 : f32
      %14 = vector.broadcast %cst_7 : f32 to vector<4x8x1xf32>
      %c0_8 = arith.constant 0 : index
      %c0_9 = arith.constant 0 : index
      %c0_10 = arith.constant 0 : index
      %15 = vector.load %arg8[%c0_8, %c0_9, %c0_10] : memref<4x8x1xf32, #tpu.memory_space<vmem>>, vector<4x8x1xf32>
      tpu.vector_store %arg8[%c0_8, %c0_9, %c0_10], %14 {strides = array<i32>} : memref<4x8x1xf32, #tpu.memory_space<vmem>>, vector<4x8x1xf32>,
      %cst_11 = arith.constant 0.000000e+00 : f32
      %16 = vector.broadcast %cst_11 : f32 to vector<4x8x8xf32>
      %c0_12 = arith.constant 0 : index
      %c0_13 = arith.constant 0 : index
      %c0_14 = arith.constant 0 : index
      %17 = vector.load %arg9[%c0_12, %c0_13, %c0_14] : memref<4x8x8xf32, #tpu.memory_space<vmem>>, vector<4x8x8xf32>
      tpu.vector_store %arg9[%c0_12, %c0_13, %c0_14], %16 {strides = array<i32>} : memref<4x8x8xf32, #tpu.memory_space<vmem>>, vector<4x8x8xf32>,
    } else {
    }
    %3 = arith.cmpi slt, %arg2, %arg1 : i32
    %4 = arith.extui %3 : i1 to i32
    %c0_i32_1 = arith.constant 0 : i32
    %5 = arith.cmpi ne, %4, %c0_i32_1 : i32
    scf.if %5 {
      %c0 = arith.constant 0 : index
      %c0_5 = arith.constant 0 : index
      %c0_6 = arith.constant 0 : index
      %c0_7 = arith.constant 0 : index
      %12 = vector.load %arg3[%c0, %c0_5, %c0_6, %c0_7] : memref<1x4x8x8xbf16, #tpu.memory_space<vmem>>, vector<1x4x8x8xbf16>
      %13 = vector.shape_cast %12 : vector<1x4x8x8xbf16> to vector<4x8x8xbf16>
      %c0_8 = arith.constant 0 : index
      %c0_9 = arith.constant 0 : index
      %c0_10 = arith.constant 0 : index
      %c0_11 = arith.constant 0 : index
      %14 = vector.load %arg4[%c0_8, %c0_9, %c0_10, %c0_11] : memref<1x4x8x8xbf16, #tpu.memory_space<vmem>>, vector<1x4x8x8xbf16>
      %15 = vector.shape_cast %14 : vector<1x4x8x8xbf16> to vector<4x8x8xbf16>
      %c0_12 = arith.constant 0 : index
      %c0_13 = arith.constant 0 : index
      %c0_14 = arith.constant 0 : index
      %c0_15 = arith.constant 0 : index
      %16 = vector.load %arg5[%c0_12, %c0_13, %c0_14, %c0_15] : memref<1x4x8x8xbf16, #tpu.memory_space<vmem>>, vector<1x4x8x8xbf16>
      %17 = vector.shape_cast %16 : vector<1x4x8x8xbf16> to vector<4x8x8xbf16>
      "tpu.trace_start"() <{level = 10 : i32, message = "hqd,hkd->hqk"}> : () -> ()
      %cst = arith.constant dense<0.000000e+00> : vector<4x8x8xf32>
      %18 = tpu.matmul %13, %15, %cst {dimension_numbers = #tpu.dot_dimension_numbers<[2], [2], [1], [1], [0, 0, 0, 1, 1, 1], [0], [0]>} : vector<4x8x8xbf16>, vector<4x8x8xbf16>, vector<4x8x8xf32> -> vector<4x8x8xf32>
      "tpu.trace_stop"() : () -> ()
      %cst_16 = arith.constant 0.353553385 : f32
      %19 = vector.broadcast %cst_16 : f32 to vector<4x8x8xf32>
      %20 = arith.mulf %18, %19 : vector<4x8x8xf32>
      %c0_17 = arith.constant 0 : index
      %c0_18 = arith.constant 0 : index
      %c0_19 = arith.constant 0 : index
      %21 = vector.load %arg7[%c0_17, %c0_18, %c0_19] : memref<4x8x1xf32, #tpu.memory_space<vmem>>, vector<4x8x1xf32>
      %cst_20 = arith.constant dense<0xFF800000> : vector<4x8xf32>
      %22 = vector.multi_reduction <maximumf>, %20, %cst_20 [2] : vector<4x8x8xf32> to vector<4x8xf32>
      %23 = vector.shape_cast %22 : vector<4x8xf32> to vector<4x8x1xf32>
      %24 = arith.maximumf %21, %23 : vector<4x8x1xf32>
      %25 = arith.subf %21, %24 : vector<4x8x1xf32>
      %26 = math.exp %25 : vector<4x8x1xf32>
      %27 = vector.broadcast %24 : vector<4x8x1xf32> to vector<4x8x8xf32>
      %28 = arith.subf %20, %27 : vector<4x8x8xf32>
      %29 = math.exp %28 : vector<4x8x8xf32>
      %c0_21 = arith.constant 0 : index
      %c0_22 = arith.constant 0 : index
      %c0_23 = arith.constant 0 : index
      %30 = vector.load %arg8[%c0_21, %c0_22, %c0_23] : memref<4x8x1xf32, #tpu.memory_space<vmem>>, vector<4x8x1xf32>
      %31 = arith.mulf %26, %30 : vector<4x8x1xf32>
      %cst_24 = arith.constant dense<0.000000e+00> : vector<4x8xf32>
      %32 = vector.multi_reduction <add>, %29, %cst_24 [2] : vector<4x8x8xf32> to vector<4x8xf32>
      %33 = vector.shape_cast %32 : vector<4x8xf32> to vector<4x8x1xf32>
      %34 = arith.addf %31, %33 : vector<4x8x1xf32>
      %c0_25 = arith.constant 0 : index
      %c0_26 = arith.constant 0 : index
      %c0_27 = arith.constant 0 : index
      %35 = vector.load %arg8[%c0_25, %c0_26, %c0_27] : memref<4x8x1xf32, #tpu.memory_space<vmem>>, vector<4x8x1xf32>
      tpu.vector_store %arg8[%c0_25, %c0_26, %c0_27], %34 {strides = array<i32>} : memref<4x8x1xf32, #tpu.memory_space<vmem>>, vector<4x8x1xf32>,
      %c0_28 = arith.constant 0 : index
      %c0_29 = arith.constant 0 : index
      %c0_30 = arith.constant 0 : index
      %36 = vector.load %arg9[%c0_28, %c0_29, %c0_30] : memref<4x8x8xf32, #tpu.memory_space<vmem>>, vector<4x8x8xf32>
      %37 = vector.broadcast %26 : vector<4x8x1xf32> to vector<4x8x8xf32>
      %38 = arith.mulf %37, %36 : vector<4x8x8xf32>
      %39 = arith.truncf %29 : vector<4x8x8xf32> to vector<4x8x8xbf16>
      "tpu.trace_start"() <{level = 10 : i32, message = "hqk,hkd->hqd"}> : () -> ()
      %cst_31 = arith.constant dense<0.000000e+00> : vector<4x8x8xf32>
      %40 = tpu.matmul %39, %17, %cst_31 {dimension_numbers = #tpu.dot_dimension_numbers<[2], [1], [1], [2], [0, 0, 0, 1, 1, 2], [0], [0]>} : vector<4x8x8xbf16>, vector<4x8x8xbf16>, vector<4x8x8xf32> -> vector<4x8x8xf32>
      "tpu.trace_stop"() : () -> ()
      %41 = arith.addf %38, %40 : vector<4x8x8xf32>
      %c0_32 = arith.constant 0 : index
      %c0_33 = arith.constant 0 : index
      %c0_34 = arith.constant 0 : index
      %42 = vector.load %arg9[%c0_32, %c0_33, %c0_34] : memref<4x8x8xf32, #tpu.memory_space<vmem>>, vector<4x8x8xf32>
      tpu.vector_store %arg9[%c0_32, %c0_33, %c0_34], %41 {strides = array<i32>} : memref<4x8x8xf32, #tpu.memory_space<vmem>>, vector<4x8x8xf32>,
      %c0_35 = arith.constant 0 : index
      %c0_36 = arith.constant 0 : index
      %c0_37 = arith.constant 0 : index
      %43 = vector.load %arg7[%c0_35, %c0_36, %c0_37] : memref<4x8x1xf32, #tpu.memory_space<vmem>>, vector<4x8x1xf32>
      tpu.vector_store %arg7[%c0_35, %c0_36, %c0_37], %24 {strides = array<i32>} : memref<4x8x1xf32, #tpu.memory_space<vmem>>, vector<4x8x1xf32>,
    } else {
    }
    %6 = arith.cmpi eq, %arg2, %arg1 : i32
    %7 = arith.extui %6 : i1 to i32
    %c0_i32_2 = arith.constant 0 : i32
    %8 = arith.cmpi ne, %7, %c0_i32_2 : i32
    scf.if %8 {
      %c0 = arith.constant 0 : index
      %c0_5 = arith.constant 0 : index
      %c0_6 = arith.constant 0 : index
      %c0_7 = arith.constant 0 : index
      %12 = vector.load %arg3[%c0, %c0_5, %c0_6, %c0_7] : memref<1x4x8x8xbf16, #tpu.memory_space<vmem>>, vector<1x4x8x8xbf16>
      %13 = vector.shape_cast %12 : vector<1x4x8x8xbf16> to vector<4x8x8xbf16>
      %c0_8 = arith.constant 0 : index
      %c0_9 = arith.constant 0 : index
      %c0_10 = arith.constant 0 : index
      %c0_11 = arith.constant 0 : index
      %14 = vector.load %arg4[%c0_8, %c0_9, %c0_10, %c0_11] : memref<1x4x8x8xbf16, #tpu.memory_space<vmem>>, vector<1x4x8x8xbf16>
      %15 = vector.shape_cast %14 : vector<1x4x8x8xbf16> to vector<4x8x8xbf16>
      %c0_12 = arith.constant 0 : index
      %c0_13 = arith.constant 0 : index
      %c0_14 = arith.constant 0 : index
      %c0_15 = arith.constant 0 : index
      %16 = vector.load %arg5[%c0_12, %c0_13, %c0_14, %c0_15] : memref<1x4x8x8xbf16, #tpu.memory_space<vmem>>, vector<1x4x8x8xbf16>
      %17 = vector.shape_cast %16 : vector<1x4x8x8xbf16> to vector<4x8x8xbf16>
      "tpu.trace_start"() <{level = 10 : i32, message = "hqd,hkd->hqk"}> : () -> ()
      %cst = arith.constant dense<0.000000e+00> : vector<4x8x8xf32>
      %18 = tpu.matmul %13, %15, %cst {dimension_numbers = #tpu.dot_dimension_numbers<[2], [2], [1], [1], [0, 0, 0, 1, 1, 1], [0], [0]>} : vector<4x8x8xbf16>, vector<4x8x8xbf16>, vector<4x8x8xf32> -> vector<4x8x8xf32>
      "tpu.trace_stop"() : () -> ()
      %cst_16 = arith.constant 0.353553385 : f32
      %19 = vector.broadcast %cst_16 : f32 to vector<4x8x8xf32>
      %20 = arith.mulf %18, %19 : vector<4x8x8xf32>
      %21 = tpu.iota {dimensions = array<i32: 1>} : vector<4x8x8xi32>
      %22 = tpu.iota {dimensions = array<i32: 2>} : vector<4x8x8xi32>
      %23 = arith.cmpi sle, %22, %21 : vector<4x8x8xi32>
      %cst_17 = arith.constant -1.000000e+30 : f32
      %24 = vector.broadcast %cst_17 : f32 to vector<4x8x8xf32>
      %25 = arith.select %23, %20, %24 : vector<4x8x8xi1>, vector<4x8x8xf32>
      %c0_18 = arith.constant 0 : index
      %c0_19 = arith.constant 0 : index
      %c0_20 = arith.constant 0 : index
      %26 = vector.load %arg7[%c0_18, %c0_19, %c0_20] : memref<4x8x1xf32, #tpu.memory_space<vmem>>, vector<4x8x1xf32>
      %cst_21 = arith.constant dense<0xFF800000> : vector<4x8xf32>
      %27 = vector.multi_reduction <maximumf>, %25, %cst_21 [2] : vector<4x8x8xf32> to vector<4x8xf32>
      %28 = vector.shape_cast %27 : vector<4x8xf32> to vector<4x8x1xf32>
      %29 = arith.maximumf %26, %28 : vector<4x8x1xf32>
      %30 = arith.subf %26, %29 : vector<4x8x1xf32>
      %31 = math.exp %30 : vector<4x8x1xf32>
      %32 = vector.broadcast %29 : vector<4x8x1xf32> to vector<4x8x8xf32>
      %33 = arith.subf %25, %32 : vector<4x8x8xf32>
      %34 = math.exp %33 : vector<4x8x8xf32>
      %c0_22 = arith.constant 0 : index
      %c0_23 = arith.constant 0 : index
      %c0_24 = arith.constant 0 : index
      %35 = vector.load %arg8[%c0_22, %c0_23, %c0_24] : memref<4x8x1xf32, #tpu.memory_space<vmem>>, vector<4x8x1xf32>
      %36 = arith.mulf %31, %35 : vector<4x8x1xf32>
      %cst_25 = arith.constant dense<0.000000e+00> : vector<4x8xf32>
      %37 = vector.multi_reduction <add>, %34, %cst_25 [2] : vector<4x8x8xf32> to vector<4x8xf32>
      %38 = vector.shape_cast %37 : vector<4x8xf32> to vector<4x8x1xf32>
      %39 = arith.addf %36, %38 : vector<4x8x1xf32>
      %c0_26 = arith.constant 0 : index
      %c0_27 = arith.constant 0 : index
      %c0_28 = arith.constant 0 : index
      %40 = vector.load %arg8[%c0_26, %c0_27, %c0_28] : memref<4x8x1xf32, #tpu.memory_space<vmem>>, vector<4x8x1xf32>
      tpu.vector_store %arg8[%c0_26, %c0_27, %c0_28], %39 {strides = array<i32>} : memref<4x8x1xf32, #tpu.memory_space<vmem>>, vector<4x8x1xf32>,
      %c0_29 = arith.constant 0 : index
      %c0_30 = arith.constant 0 : index
      %c0_31 = arith.constant 0 : index
      %41 = vector.load %arg9[%c0_29, %c0_30, %c0_31] : memref<4x8x8xf32, #tpu.memory_space<vmem>>, vector<4x8x8xf32>
      %42 = vector.broadcast %31 : vector<4x8x1xf32> to vector<4x8x8xf32>
      %43 = arith.mulf %42, %41 : vector<4x8x8xf32>
      %44 = arith.truncf %34 : vector<4x8x8xf32> to vector<4x8x8xbf16>
      "tpu.trace_start"() <{level = 10 : i32, message = "hqk,hkd->hqd"}> : () -> ()
      %cst_32 = arith.constant dense<0.000000e+00> : vector<4x8x8xf32>
      %45 = tpu.matmul %44, %17, %cst_32 {dimension_numbers = #tpu.dot_dimension_numbers<[2], [1], [1], [2], [0, 0, 0, 1, 1, 2], [0], [0]>} : vector<4x8x8xbf16>, vector<4x8x8xbf16>, vector<4x8x8xf32> -> vector<4x8x8xf32>
      "tpu.trace_stop"() : () -> ()
      %46 = arith.addf %43, %45 : vector<4x8x8xf32>
      %c0_33 = arith.constant 0 : index
      %c0_34 = arith.constant 0 : index
      %c0_35 = arith.constant 0 : index
      %47 = vector.load %arg9[%c0_33, %c0_34, %c0_35] : memref<4x8x8xf32, #tpu.memory_space<vmem>>, vector<4x8x8xf32>
      tpu.vector_store %arg9[%c0_33, %c0_34, %c0_35], %46 {strides = array<i32>} : memref<4x8x8xf32, #tpu.memory_space<vmem>>, vector<4x8x8xf32>,
      %c0_36 = arith.constant 0 : index
      %c0_37 = arith.constant 0 : index
      %c0_38 = arith.constant 0 : index
      %48 = vector.load %arg7[%c0_36, %c0_37, %c0_38] : memref<4x8x1xf32, #tpu.memory_space<vmem>>, vector<4x8x1xf32>
      tpu.vector_store %arg7[%c0_36, %c0_37, %c0_38], %29 {strides = array<i32>} : memref<4x8x1xf32, #tpu.memory_space<vmem>>, vector<4x8x1xf32>,
    } else {
    }
    %c0_i32_3 = arith.constant 0 : i32
    %9 = arith.cmpi eq, %arg2, %c0_i32_3 : i32
    %10 = arith.extui %9 : i1 to i32
    %c0_i32_4 = arith.constant 0 : i32
    %11 = arith.cmpi ne, %10, %c0_i32_4 : i32
    scf.if %11 {
      %c0 = arith.constant 0 : index
      %c0_5 = arith.constant 0 : index
      %c0_6 = arith.constant 0 : index
      %12 = vector.load %arg9[%c0, %c0_5, %c0_6] : memref<4x8x8xf32, #tpu.memory_space<vmem>>, vector<4x8x8xf32>
      %c0_7 = arith.constant 0 : index
      %c0_8 = arith.constant 0 : index
      %c0_9 = arith.constant 0 : index
      %13 = vector.load %arg8[%c0_7, %c0_8, %c0_9] : memref<4x8x1xf32, #tpu.memory_space<vmem>>, vector<4x8x1xf32>
      %14 = tpu.reciprocal %13 {approx = true} : vector<4x8x1xf32> -> vector<4x8x1xf32>
      %15 = vector.broadcast %14 : vector<4x8x1xf32> to vector<4x8x8xf32>
      %16 = arith.mulf %12, %15 : vector<4x8x8xf32>
      %17 = arith.truncf %16 : vector<4x8x8xf32> to vector<4x8x8xbf16>
      %c0_10 = arith.constant 0 : index
      %c0_11 = arith.constant 0 : index
      %c0_12 = arith.constant 0 : index
      %c0_13 = arith.constant 0 : index
      %18 = vector.load %arg6[%c0_10, %c0_11, %c0_12, %c0_13] : memref<1x4x8x8xbf16, #tpu.memory_space<vmem>>, vector<1x4x8x8xbf16>
      %19 = vector.shape_cast %18 : vector<1x4x8x8xbf16> to vector<4x8x8xbf16>
      %20 = vector.shape_cast %17 : vector<4x8x8xbf16> to vector<1x4x8x8xbf16>
      tpu.vector_store %arg6[%c0_10, %c0_11, %c0_12, %c0_13], %20 {strides = array<i32>} : memref<1x4x8x8xbf16, #tpu.memory_space<vmem>>, vector<1x4x8x8xbf16>,
    } else {
    }
    return
  }
  func.func @transform_0(%arg0: i32, %arg1: i32, %arg2: i32) -> (i32, i32, i32, i32) {
    %c0_i32 = arith.constant 0 : i32
    %c0_i32_0 = arith.constant 0 : i32
    %c0_i32_1 = arith.constant 0 : i32
    return %arg0, %c0_i32, %arg1, %c0_i32_0 : i32, i32, i32, i32
  }
  func.func @transform_1(%arg0: i32, %arg1: i32, %arg2: i32) -> (i32, i32, i32, i32) {
    %0 = arith.minsi %arg2, %arg1 : i32
    %c0_i32 = arith.constant 0 : i32
    %c0_i32_0 = arith.constant 0 : i32
    %c0_i32_1 = arith.constant 0 : i32
    return %arg0, %c0_i32, %0, %c0_i32_0 : i32, i32, i32, i32
  }
  func.func @transform_2(%arg0: i32, %arg1: i32, %arg2: i32) -> (i32, i32, i32, i32) {
    %0 = arith.minsi %arg2, %arg1 : i32
    %c0_i32 = arith.constant 0 : i32
    %c0_i32_0 = arith.constant 0 : i32
    %c0_i32_1 = arith.constant 0 : i32
    return %arg0, %c0_i32, %0, %c0_i32_0 : i32, i32, i32, i32
  }
  func.func @transform_3(%arg0: i32, %arg1: i32, %arg2: i32) -> (i32, i32, i32, i32) {
    %c0_i32 = arith.constant 0 : i32
    %c0_i32_0 = arith.constant 0 : i32
    %c0_i32_1 = arith.constant 0 : i32
    return %arg0, %c0_i32, %arg1, %c0_i32_0 : i32, i32, i32, i32
  }
}

module attributes {stable_mosaic.version = 11 : i64} {
  func.func @_norm_gated_mlp_kernel(%arg0: i32, %arg1: i32, %arg2: memref<16x32xf32, #tpu.memory_space<vmem>>, %arg3: memref<1x32xf32, #tpu.memory_space<vmem>>, %arg4: memref<32x128xbf16, #tpu.memory_space<vmem>>, %arg5: memref<32x128xbf16, #tpu.memory_space<vmem>>, %arg6: memref<16x128xbf16, #tpu.memory_space<vmem>>) attributes {dimension_semantics = [#tpu.dimension_semantics<parallel>, #tpu.dimension_semantics<parallel>], iteration_bounds = array<i64: 1, 1>, scalar_prefetch = 0 : i64, scratch_operands = 0 : i64, tpu.core_type = #tpu.core_type<tc>, window_params = [{transform_indices = @transform_0, window_bounds = array<i64: 16, 32>}, {pipeline_mode = #tpu.pipeline_mode<synchronous>, transform_indices = @transform_1, window_bounds = array<i64: 1, 32>}, {transform_indices = @transform_2, window_bounds = array<i64: 32, 128>}, {transform_indices = @transform_3, window_bounds = array<i64: 32, 128>}, {transform_indices = @transform_4, window_bounds = array<i64: 16, 128>}]} {
    %c0 = arith.constant 0 : index
    %c0_0 = arith.constant 0 : index
    %0 = vector.load %arg2[%c0, %c0_0] : memref<16x32xf32, #tpu.memory_space<vmem>>, vector<16x32xf32>
    %1 = arith.mulf %0, %0 : vector<16x32xf32>
    %cst = arith.constant dense<0.000000e+00> : vector<16xf32>
    %2 = vector.multi_reduction <add>, %1, %cst [1] : vector<16x32xf32> to vector<16xf32>
    %3 = vector.shape_cast %2 : vector<16xf32> to vector<16x1xf32>
    %cst_1 = arith.constant 3.200000e+01 : f32
    %4 = vector.broadcast %cst_1 : f32 to vector<16x1xf32>
    %5 = arith.divf %3, %4 : vector<16x1xf32>
    %6 = math.sqrt %5 : vector<16x1xf32>
    %c0_2 = arith.constant 0 : index
    %c0_3 = arith.constant 0 : index
    %7 = vector.load %arg3[%c0_2, %c0_3] : memref<1x32xf32, #tpu.memory_space<vmem>>, vector<1x32xf32>
    %8 = vector.broadcast %7 : vector<1x32xf32> to vector<16x32xf32>
    %9 = arith.mulf %8, %0 : vector<16x32xf32>
    %cst_4 = arith.constant 9.99999997E-7 : f32
    %10 = vector.broadcast %cst_4 : f32 to vector<16x1xf32>
    %11 = arith.addf %6, %10 : vector<16x1xf32>
    %12 = vector.broadcast %11 : vector<16x1xf32> to vector<16x32xf32>
    %13 = arith.divf %9, %12 : vector<16x32xf32>
    %14 = arith.truncf %13 : vector<16x32xf32> to vector<16x32xbf16>
    %c0_5 = arith.constant 0 : index
    %c0_6 = arith.constant 0 : index
    %15 = vector.load %arg4[%c0_5, %c0_6] : memref<32x128xbf16, #tpu.memory_space<vmem>>, vector<32x128xbf16>
    %cst_7 = arith.constant dense<0.000000e+00> : vector<16x128xf32>
    %16 = tpu.matmul %14, %15, %cst_7 {dimension_numbers = #tpu.dot_dimension_numbers<[1], [0], [0], [1], [0, 0, 1, 1], [], []>} : vector<16x32xbf16>, vector<32x128xbf16>, vector<16x128xf32> -> vector<16x128xf32>
    %c0_8 = arith.constant 0 : index
    %c0_9 = arith.constant 0 : index
    %17 = vector.load %arg5[%c0_8, %c0_9] : memref<32x128xbf16, #tpu.memory_space<vmem>>, vector<32x128xbf16>
    %cst_10 = arith.constant dense<0.000000e+00> : vector<16x128xf32>
    %18 = tpu.matmul %14, %17, %cst_10 {dimension_numbers = #tpu.dot_dimension_numbers<[1], [0], [0], [1], [0, 0, 1, 1], [], []>} : vector<16x32xbf16>, vector<32x128xbf16>, vector<16x128xf32> -> vector<16x128xf32>
    %cst_11 = arith.constant 0.000000e+00 : f32
    %19 = vector.broadcast %cst_11 : f32 to vector<16x128xf32>
    %20 = arith.maximumf %16, %19 : vector<16x128xf32>
    %21 = arith.mulf %20, %18 : vector<16x128xf32>
    %22 = arith.truncf %21 : vector<16x128xf32> to vector<16x128xbf16>
    %c0_12 = arith.constant 0 : index
    %c0_13 = arith.constant 0 : index
    %23 = vector.load %arg6[%c0_12, %c0_13] : memref<16x128xbf16, #tpu.memory_space<vmem>>, vector<16x128xbf16>
    tpu.vector_store %arg6[%c0_12, %c0_13], %22 {strides = array<i32>} : memref<16x128xbf16, #tpu.memory_space<vmem>>, vector<16x128xbf16>,
    return
  }
  func.func @transform_0(%arg0: i32, %arg1: i32) -> (i32, i32) {
    %c0_i32 = arith.constant 0 : i32
    %c0_i32_0 = arith.constant 0 : i32
    return %arg0, %c0_i32 : i32, i32
  }
  func.func @transform_1(%arg0: i32, %arg1: i32) -> (i32, i32) {
    %c0_i32 = arith.constant 0 : i32
    %c0_i32_0 = arith.constant 0 : i32
    %c0_i32_1 = arith.constant 0 : i32
    return %c0_i32, %c0_i32_0 : i32, i32
  }
  func.func @transform_2(%arg0: i32, %arg1: i32) -> (i32, i32) {
    %c0_i32 = arith.constant 0 : i32
    %c0_i32_0 = arith.constant 0 : i32
    return %c0_i32, %arg1 : i32, i32
  }
  func.func @transform_3(%arg0: i32, %arg1: i32) -> (i32, i32) {
    %c0_i32 = arith.constant 0 : i32
    %c0_i32_0 = arith.constant 0 : i32
    return %c0_i32, %arg1 : i32, i32
  }
  func.func @transform_4(%arg0: i32, %arg1: i32) -> (i32, i32) {
    %c0_i32 = arith.constant 0 : i32
    return %arg0, %arg1 : i32, i32
  }
}

module attributes {stable_mosaic.version = 11 : i64} {
  func.func @_mm_res_kernel(%arg0: i32, %arg1: i32, %arg2: memref<16x128xbf16, #tpu.memory_space<vmem>>, %arg3: memref<128x32xbf16, #tpu.memory_space<vmem>>, %arg4: memref<16x32xf32, #tpu.memory_space<vmem>>, %arg5: memref<16x32xf32, #tpu.memory_space<vmem>>) attributes {dimension_semantics = [#tpu.dimension_semantics<parallel>, #tpu.dimension_semantics<parallel>], iteration_bounds = array<i64: 1, 1>, scalar_prefetch = 0 : i64, scratch_operands = 0 : i64, tpu.core_type = #tpu.core_type<tc>, window_params = [{transform_indices = @transform_0, window_bounds = array<i64: 16, 128>}, {transform_indices = @transform_1, window_bounds = array<i64: 128, 32>}, {transform_indices = @transform_2, window_bounds = array<i64: 16, 32>}, {transform_indices = @transform_3, window_bounds = array<i64: 16, 32>}]} {
    %c0 = arith.constant 0 : index
    %c0_0 = arith.constant 0 : index
    %0 = vector.load %arg2[%c0, %c0_0] : memref<16x128xbf16, #tpu.memory_space<vmem>>, vector<16x128xbf16>
    %c0_1 = arith.constant 0 : index
    %c0_2 = arith.constant 0 : index
    %1 = vector.load %arg3[%c0_1, %c0_2] : memref<128x32xbf16, #tpu.memory_space<vmem>>, vector<128x32xbf16>
    %cst = arith.constant dense<0.000000e+00> : vector<16x32xf32>
    %2 = tpu.matmul %0, %1, %cst {dimension_numbers = #tpu.dot_dimension_numbers<[1], [0], [0], [1], [0, 0, 1, 1], [], []>} : vector<16x128xbf16>, vector<128x32xbf16>, vector<16x32xf32> -> vector<16x32xf32>
    %c0_3 = arith.constant 0 : index
    %c0_4 = arith.constant 0 : index
    %3 = vector.load %arg4[%c0_3, %c0_4] : memref<16x32xf32, #tpu.memory_space<vmem>>, vector<16x32xf32>
    %4 = arith.addf %2, %3 : vector<16x32xf32>
    %c0_5 = arith.constant 0 : index
    %c0_6 = arith.constant 0 : index
    %5 = vector.load %arg5[%c0_5, %c0_6] : memref<16x32xf32, #tpu.memory_space<vmem>>, vector<16x32xf32>
    tpu.vector_store %arg5[%c0_5, %c0_6], %4 {strides = array<i32>} : memref<16x32xf32, #tpu.memory_space<vmem>>, vector<16x32xf32>,
    return
  }
  func.func @transform_0(%arg0: i32, %arg1: i32) -> (i32, i32) {
    %c0_i32 = arith.constant 0 : i32
    %c0_i32_0 = arith.constant 0 : i32
    return %arg0, %c0_i32 : i32, i32
  }
  func.func @transform_1(%arg0: i32, %arg1: i32) -> (i32, i32) {
    %c0_i32 = arith.constant 0 : i32
    %c0_i32_0 = arith.constant 0 : i32
    return %c0_i32, %arg1 : i32, i32
  }
  func.func @transform_2(%arg0: i32, %arg1: i32) -> (i32, i32) {
    %c0_i32 = arith.constant 0 : i32
    return %arg0, %arg1 : i32, i32
  }
  func.func @transform_3(%arg0: i32, %arg1: i32) -> (i32, i32) {
    %c0_i32 = arith.constant 0 : i32
    return %arg0, %arg1 : i32, i32
  }
}

module attributes {stable_mosaic.version = 11 : i64} {
  func.func @_norm_mm_kernel(%arg0: i32, %arg1: i32, %arg2: memref<16x32xf32, #tpu.memory_space<vmem>>, %arg3: memref<1x32xf32, #tpu.memory_space<vmem>>, %arg4: memref<32x64xbf16, #tpu.memory_space<vmem>>, %arg5: memref<16x64xf32, #tpu.memory_space<vmem>>) attributes {dimension_semantics = [#tpu.dimension_semantics<parallel>, #tpu.dimension_semantics<parallel>], iteration_bounds = array<i64: 1, 1>, scalar_prefetch = 0 : i64, scratch_operands = 0 : i64, tpu.core_type = #tpu.core_type<tc>, window_params = [{transform_indices = @transform_0, window_bounds = array<i64: 16, 32>}, {pipeline_mode = #tpu.pipeline_mode<synchronous>, transform_indices = @transform_1, window_bounds = array<i64: 1, 32>}, {transform_indices = @transform_2, window_bounds = array<i64: 32, 64>}, {transform_indices = @transform_3, window_bounds = array<i64: 16, 64>}]} {
    %c0 = arith.constant 0 : index
    %c0_0 = arith.constant 0 : index
    %0 = vector.load %arg2[%c0, %c0_0] : memref<16x32xf32, #tpu.memory_space<vmem>>, vector<16x32xf32>
    %1 = arith.mulf %0, %0 : vector<16x32xf32>
    %cst = arith.constant dense<0.000000e+00> : vector<16xf32>
    %2 = vector.multi_reduction <add>, %1, %cst [1] : vector<16x32xf32> to vector<16xf32>
    %3 = vector.shape_cast %2 : vector<16xf32> to vector<16x1xf32>
    %cst_1 = arith.constant 3.200000e+01 : f32
    %4 = vector.broadcast %cst_1 : f32 to vector<16x1xf32>
    %5 = arith.divf %3, %4 : vector<16x1xf32>
    %6 = math.sqrt %5 : vector<16x1xf32>
    %c0_2 = arith.constant 0 : index
    %c0_3 = arith.constant 0 : index
    %7 = vector.load %arg3[%c0_2, %c0_3] : memref<1x32xf32, #tpu.memory_space<vmem>>, vector<1x32xf32>
    %8 = vector.broadcast %7 : vector<1x32xf32> to vector<16x32xf32>
    %9 = arith.mulf %8, %0 : vector<16x32xf32>
    %cst_4 = arith.constant 9.99999997E-7 : f32
    %10 = vector.broadcast %cst_4 : f32 to vector<16x1xf32>
    %11 = arith.addf %6, %10 : vector<16x1xf32>
    %12 = vector.broadcast %11 : vector<16x1xf32> to vector<16x32xf32>
    %13 = arith.divf %9, %12 : vector<16x32xf32>
    %14 = arith.truncf %13 : vector<16x32xf32> to vector<16x32xbf16>
    %c0_5 = arith.constant 0 : index
    %c0_6 = arith.constant 0 : index
    %15 = vector.load %arg4[%c0_5, %c0_6] : memref<32x64xbf16, #tpu.memory_space<vmem>>, vector<32x64xbf16>
    %cst_7 = arith.constant dense<0.000000e+00> : vector<16x64xf32>
    %16 = tpu.matmul %14, %15, %cst_7 {dimension_numbers = #tpu.dot_dimension_numbers<[1], [0], [0], [1], [0, 0, 1, 1], [], []>} : vector<16x32xbf16>, vector<32x64xbf16>, vector<16x64xf32> -> vector<16x64xf32>
    %c0_8 = arith.constant 0 : index
    %c0_9 = arith.constant 0 : index
    %17 = vector.load %arg5[%c0_8, %c0_9] : memref<16x64xf32, #tpu.memory_space<vmem>>, vector<16x64xf32>
    tpu.vector_store %arg5[%c0_8, %c0_9], %16 {strides = array<i32>} : memref<16x64xf32, #tpu.memory_space<vmem>>, vector<16x64xf32>,
    return
  }
  func.func @transform_0(%arg0: i32, %arg1: i32) -> (i32, i32) {
    %c0_i32 = arith.constant 0 : i32
    %c0_i32_0 = arith.constant 0 : i32
    return %arg0, %c0_i32 : i32, i32
  }
  func.func @transform_1(%arg0: i32, %arg1: i32) -> (i32, i32) {
    %c0_i32 = arith.constant 0 : i32
    %c0_i32_0 = arith.constant 0 : i32
    %c0_i32_1 = arith.constant 0 : i32
    return %c0_i32, %c0_i32_0 : i32, i32
  }
  func.func @transform_2(%arg0: i32, %arg1: i32) -> (i32, i32) {
    %c0_i32 = arith.constant 0 : i32
    %c0_i32_0 = arith.constant 0 : i32
    return %c0_i32, %arg1 : i32, i32
  }
  func.func @transform_3(%arg0: i32, %arg1: i32) -> (i32, i32) {
    %c0_i32 = arith.constant 0 : i32
    return %arg0, %arg1 : i32, i32
  }
}

</mosaic_0001>

<bundles_post_ra>
// kernel: gpt_forward.11
= control target key start
LH: loop header
LB: loop body
LE: loop exit
PB: predicated region body
PF: predicated region fallthrough
CT: control target
= control target key end

     0   :  { %vm19_vm0 = vcmask 261120   ;;  %v165_v6 = vmov 0.0   ;;  %vm166_vm1 = vmmov 0   ;;  %vm127_vm6 = vcmask 781312   ;;  %s211_s0 = inlined_call_operand.vmem [shape: f32[16,32], index: 0, kind: input, shape index: {}]   ;;  %s212_s2 = inlined_call_operand.vmem [shape: bf16[32,96], index: 2, kind: input, shape index: {}]   ;;  %s213_s1 = inlined_call_operand.vmem [shape: f32[1,32], index: 1, kind: input, shape index: {}]   ;;  %s214_s3 = inlined_call_operand.vmem [shape: bf16[16,96], index: 3, kind: output, shape index: {}]  }
   0x1   :  { %v15_v0 = vld [vmem:[%s211_s0] sm:$0xff]  ;;  %v16_v1 = vld [vmem:[%s211_s0 + $0x8] sm:$0xff]  ;;  %145 = vmatprep.subr.bf16.mxu0 %v165_v6  ;;  %149 = vmatprep.mubr.msk.bf16.mxu0 %vm166_vm1, %v165_v6 }
   0x2   :  { %v17_v2 = vmul.f32 %v15_v0, %v15_v0  ;;  %v18_v3 = vmul.f32 %v16_v1, %v16_v1  ;;  %v155_v7 = vld [vmem:[%s212_s2] sm:$0xff]   ;;  %v156_v8 = vld [vmem:[%s212_s2 + $0x8] sm:$0xff]  }
   0x3   :  { %146 = vmatpush3.bf16.msra.mxu0 %v155_v7  ;;  %v134_v25 = vld [vmem:[%s213_s1] ss:$0 sm:$0xff] }
   0x4   :  { %v20_v4 = vsel %vm19_vm0, %v17_v2, 0.0  ;;  %v23_v5 = vsel %vm19_vm0, %v18_v3, 0.0  ;;  %147 = vmatprep.subr.bf16.mxu0 %v165_v6  ;;  %v50_v26 = vmul.f32 %v134_v25, %v15_v0  ;;  %v51_v27 = vmul.f32 %v134_v25, %v16_v1 }
   0x5   :  { %21 = vadd.xlane.f32.xlu0 %v20_v4 }
   0x7   :  { %148 = vmatpush3.bf16.msra.mxu0 %v156_v8 }
   0x9   :  { %24 = vadd.xlane.f32.xlu0 %v23_v5 }
  0x92   :  { %v22_v9 = vpop.xlane.xlu0 %21 }
  0x93   :  { %v27_v10 = vmul.f32 0.03125, %v22_v9 }
  0x95   :  { %157 = vrsqrt.f32 %v27_v10  ;;  %vm31_vm2 = vcmp.eq.f32.partialorder %v27_v10, inf  ;;  %v34_v15 = vand.u32 2147483648, %v27_v10  ;;  %vm33_vm3 = vcmp.eq.f32.partialorder %v27_v10, 0.0 }
  0x96   :  { %v25_v11 = vpop.xlane.xlu0 %24 }
  0x97   :  { %v28_v12 = vmul.f32 0.03125, %v25_v11 }
  0x99   :  { %159 = vrsqrt.f32 %v28_v12  ;;  %vm38_vm4 = vcmp.eq.f32.partialorder %v28_v12, inf  ;;  %v41_v21 = vand.u32 2147483648, %v28_v12  ;;  %vm40_vm5 = vcmp.eq.f32.partialorder %v28_v12, 0.0 }
  0x9f   :  { %v158_v13 = vpop.eup %157 }
  0xa0   :  { %v30_v14 = vmul.f32 %v158_v13, %v27_v10 }
  0xa2   :  { %v32_v16 = vsel %vm31_vm2, %v27_v10, %v30_v14 }
  0xa3   :  { %v160_v17 = vpop.eup %159  ;;  %v35_v18 = vsel %vm33_vm3, %v34_v15, %v32_v16 }
  0xa4   :  { %v37_v19 = vmul.f32 %v160_v17, %v28_v12  ;;  %v52_v20 = vadd.f32 1e-06, %v35_v18 }
  0xa6   :  { %v39_v22 = vsel %vm38_vm4, %v28_v12, %v37_v19  ;;  %161 = vrcp.f32 %v52_v20 }
  0xa7   :  { %v42_v23 = vsel %vm40_vm5, %v41_v21, %v39_v22 }
  0xa8   :  { %v53_v24 = vadd.f32 1e-06, %v42_v23 }
  0xaa   :  { %163 = vrcp.f32 %v53_v24 }
  0xb0   :  { %v162_v28 = vpop.eup %161 }
  0xb1   :  { %v55_v30 = vmul.f32 %v162_v28, %v50_v26 }
  0xb4   :  { %v164_v29 = vpop.eup %163 }
  0xb5   :  { %v57_v31 = vmul.f32 %v164_v29, %v51_v27 }
  0xb7   :  { %v58_v32 = vpack.c.bf16 %v57_v31, %v55_v30 }
  0xb9   :  { %150 = vmatmul.mubr.msk.bf16.vlgmr.msra.gmra.mrb[0].mxu0 %vm19_vm0, %v58_v32 }
 0x18c   :  { %v112_v33 = vpop.f32.mrb[0].mxu0 }
 0x18d   :  { %v140_v34 = vpack.c.bf16 %v112_v33, %v112_v33  ;;  %v151_v35 = vpop.f32.mrb[1].mxu0 }
 0x18e   :  { %v115_v36 = vpop.f32.mrb[2].mxu0 }
 0x18f   :  { %128 = vst.msk [vmem:[%s214_s3] sm:$0xf] %vm127_vm6, %v140_v34  ;;  %v141_v37 = vpack.c.bf16 %v115_v36, %v115_v36  ;;  %v152_v38 = vpop.f32.mrb[3].mxu0 }
 0x191   :  { %129 = vst.msk [vmem:[%s214_s3 + $0x4] sm:$0xf] %vm127_vm6, %v141_v37 }

// kernel: gpt_forward.13
= control target key start
LH: loop header
LB: loop body
LE: loop exit
PB: predicated region body
PF: predicated region fallthrough
CT: control target
= control target key end

     0   :  { %v111_v0 = vmov 0.0   ;;  %vm112_vm0 = vmmov 0   ;;  %vm40_vm1 = vcmask 261120   ;;  %s154_s1 = inlined_call_operand.vmem [shape: bf16[32,32], index: 1, kind: input, shape index: {}]   ;;  %s155_s0 = inlined_call_operand.vmem [shape: bf16[16,32], index: 0, kind: input, shape index: {}]   ;;  %s156_s2 = inlined_call_operand.vmem [shape: f32[16,32], index: 2, kind: input, shape index: {}]   ;;  %s157_s3 = inlined_call_operand.vmem [shape: f32[16,32], index: 3, kind: output, shape index: {}]  }
   0x1   :  { %98 = vmatprep.subr.bf16.mxu0 %v111_v0  ;;  %v108_v1 = vld [vmem:[%s154_s1] sm:$0xff]   ;;  %102 = vmatprep.mubr.msk.bf16.mxu0 %vm112_vm0, %v111_v0  ;;  %v109_v2 = vld [vmem:[%s154_s1 + $0x8] sm:$0xff]  }
   0x2   :  { %99 = vmatpush3.bf16.msra.mxu0 %v108_v1  ;;  %v110_v3 = vld [vmem:[%s155_s0] sm:$0xff]   ;;  %v22_v6 = vld [vmem:[%s156_s2 + $0x8] sm:$0xff] }
   0x3   :  { %100 = vmatprep.subr.bf16.mxu0 %v111_v0  ;;  %v21_v4 = vld [vmem:[%s156_s2] sm:$0xff] }
   0x6   :  { %101 = vmatpush3.bf16.msra.mxu0 %v109_v2 }
   0x9   :  { %103 = vmatmul.mubr.msk.bf16.vlgmr.msra.gmra.mrb[0].mxu0 %vm40_vm1, %v110_v3 }
  0xdc   :  { %v78_v5 = vpop.f32.mrb[0].mxu0 }
  0xdd   :  { %v79_v7 = vadd.f32 %v78_v5, %v21_v4  ;;  %v104_v8 = vpop.f32.mrb[1].mxu0 }
  0xde   :  { %v81_v9 = vpop.f32.mrb[2].mxu0 }
  0xdf   :  { %85 = vst.msk [vmem:[%s157_s3] sm:$0xff] %vm40_vm1, %v79_v7  ;;  %v82_v10 = vadd.f32 %v81_v9, %v22_v6  ;;  %v105_v11 = vpop.f32.mrb[3].mxu0 }
  0xe1   :  { %86 = vst.msk [vmem:[%s157_s3 + $0x8] sm:$0xff] %vm40_vm1, %v82_v10 }

// kernel: gpt_forward.14
= control target key start
LH: loop header
LB: loop body
LE: loop exit
PB: predicated region body
PF: predicated region fallthrough
CT: control target
= control target key end

     0   :  { %vm22_vm0 = vcmask 261120   ;;  %v249_v6 = vmov 0.0   ;;  %vm250_vm1 = vmmov 0   ;;  %s304_s0 = inlined_call_operand.vmem [shape: f32[16,32], index: 0, kind: input, shape index: {}]   ;;  %s305_s2 = inlined_call_operand.vmem [shape: bf16[32,128], index: 2, kind: input, shape index: {}]   ;;  %s306_s3 = inlined_call_operand.vmem [shape: bf16[32,128], index: 3, kind: input, shape index: {}]   ;;  %s307_s1 = inlined_call_operand.vmem [shape: f32[1,32], index: 1, kind: input, shape index: {}]   ;;  %s308_s4 = inlined_call_operand.vmem [shape: bf16[16,128], index: 4, kind: output, shape index: {}]  }
   0x1   :  { %v18_v0 = vld [vmem:[%s304_s0] sm:$0xff]  ;;  %v19_v1 = vld [vmem:[%s304_s0 + $0x8] sm:$0xff]  ;;  %219 = vmatprep.subr.bf16.mxu0 %v249_v6  ;;  %227 = vmatprep.subr.bf16.mxu1 %v249_v6 }
   0x2   :  { %v20_v2 = vmul.f32 %v18_v0, %v18_v0  ;;  %v21_v3 = vmul.f32 %v19_v1, %v19_v1  ;;  %v237_v7 = vld [vmem:[%s305_s2] sm:$0xff]   ;;  %223 = vmatprep.mubr.msk.bf16.mxu0 %vm250_vm1, %v249_v6  ;;  %231 = vmatprep.mubr.msk.bf16.mxu1 %vm250_vm1, %v249_v6  ;;  %v239_v9 = vld [vmem:[%s305_s2 + $0x8] sm:$0xff]  }
   0x3   :  { %v238_v8 = vld [vmem:[%s306_s3] sm:$0xff]   ;;  %220 = vmatpush3.bf16.msra.mxu0 %v237_v7  ;;  %v240_v10 = vld [vmem:[%s306_s3 + $0x8] sm:$0xff]  }
   0x4   :  { %v23_v4 = vsel %vm22_vm0, %v20_v2, 0.0  ;;  %v26_v5 = vsel %vm22_vm0, %v21_v3, 0.0  ;;  %228 = vmatpush3.bf16.msra.mxu1 %v238_v8  ;;  %221 = vmatprep.subr.bf16.mxu0 %v249_v6  ;;  %v197_v27 = vld [vmem:[%s307_s1] ss:$0 sm:$0xff] }
   0x5   :  { %24 = vadd.xlane.f32.xlu0 %v23_v4  ;;  %229 = vmatprep.subr.bf16.mxu1 %v249_v6  ;;  %v53_v28 = vmul.f32 %v197_v27, %v18_v0  ;;  %v54_v29 = vmul.f32 %v197_v27, %v19_v1 }
   0x7   :  { %222 = vmatpush3.bf16.msra.mxu0 %v239_v9 }
   0x8   :  { %230 = vmatpush3.bf16.msra.mxu1 %v240_v10 }
   0x9   :  { %27 = vadd.xlane.f32.xlu0 %v26_v5 }
  0x92   :  { %v25_v11 = vpop.xlane.xlu0 %24 }
  0x93   :  { %v30_v12 = vmul.f32 0.03125, %v25_v11 }
  0x95   :  { %241 = vrsqrt.f32 %v30_v12  ;;  %vm34_vm2 = vcmp.eq.f32.partialorder %v30_v12, inf  ;;  %v37_v17 = vand.u32 2147483648, %v30_v12  ;;  %vm36_vm3 = vcmp.eq.f32.partialorder %v30_v12, 0.0 }
  0x96   :  { %v28_v13 = vpop.xlane.xlu0 %27 }
  0x97   :  { %v31_v14 = vmul.f32 0.03125, %v28_v13 }
  0x99   :  { %243 = vrsqrt.f32 %v31_v14  ;;  %vm41_vm4 = vcmp.eq.f32.partialorder %v31_v14, inf  ;;  %v44_v23 = vand.u32 2147483648, %v31_v14  ;;  %vm43_vm5 = vcmp.eq.f32.partialorder %v31_v14, 0.0 }
  0x9f   :  { %v242_v15 = vpop.eup %241 }
  0xa0   :  { %v33_v16 = vmul.f32 %v242_v15, %v30_v12 }
  0xa2   :  { %v35_v18 = vsel %vm34_vm2, %v30_v12, %v33_v16 }
  0xa3   :  { %v244_v19 = vpop.eup %243  ;;  %v38_v20 = vsel %vm36_vm3, %v37_v17, %v35_v18 }
  0xa4   :  { %v40_v21 = vmul.f32 %v244_v19, %v31_v14  ;;  %v55_v22 = vadd.f32 1e-06, %v38_v20 }
  0xa6   :  { %v42_v24 = vsel %vm41_vm4, %v31_v14, %v40_v21  ;;  %245 = vrcp.f32 %v55_v22 }
  0xa7   :  { %v45_v25 = vsel %vm43_vm5, %v44_v23, %v42_v24 }
  0xa8   :  { %v56_v26 = vadd.f32 1e-06, %v45_v25 }
  0xaa   :  { %247 = vrcp.f32 %v56_v26 }
  0xb0   :  { %v246_v30 = vpop.eup %245 }
  0xb1   :  { %v58_v32 = vmul.f32 %v246_v30, %v53_v28 }
  0xb4   :  { %v248_v31 = vpop.eup %247 }
  0xb5   :  { %v60_v33 = vmul.f32 %v248_v31, %v54_v29 }
  0xb7   :  { %v61_v34 = vpack.c.bf16 %v60_v33, %v58_v32 }
  0xb9   :  { %224 = vmatmul.mubr.msk.bf16.vlgmr.msra.gmra.mrb[0].mxu0 %vm22_vm0, %v61_v34  ;;  %232 = vmatmul.mubr.msk.bf16.vlgmr.msra.gmra.mrb[0].mxu1 %vm22_vm0, %v61_v34 }
 0x18c   :  { %v115_v35 = vpop.f32.mrb[0].mxu0  ;;  %v172_v36 = vpop.f32.mrb[0].mxu1 }
 0x18d   :  { %v179_v37 = vmax.f32 %v115_v35, 0.0  ;;  %v225_v38 = vpop.f32.mrb[1].mxu0  ;;  %v233_v39 = vpop.f32.mrb[1].mxu1 }
 0x18e   :  { %v118_v40 = vpop.f32.mrb[2].mxu0  ;;  %v175_v41 = vpop.f32.mrb[2].mxu1 }
 0x18f   :  { %v181_v42 = vmul.f32 %v179_v37, %v172_v36  ;;  %v180_v43 = vmax.f32 %v118_v40, 0.0  ;;  %v226_v44 = vpop.f32.mrb[3].mxu0  ;;  %v234_v45 = vpop.f32.mrb[3].mxu1 }
 0x191   :  { %v182_v46 = vmul.f32 %v180_v43, %v175_v41 }
 0x193   :  { %v211_v47 = vpack.c.bf16 %v182_v46, %v181_v42 }
 0x195   :  { %212 = vst [vmem:[%s308_s4] sm:$0xff] %v211_v47  }

// kernel: gpt_forward.12
= control target key start
LH: loop header
LB: loop body
LE: loop exit
PB: predicated region body
PF: predicated region fallthrough
CT: control target
= control target key end

     0   :  { %s1752_s12 = smov 0   ;;  %s1754_s13 = smov 0   ;;  %s1934_s0 = inlined_call_operand.vmem [shape: bf16[2,4,8,8], index: 0, kind: input, shape index: {}]   ;;  %s1935_s1 = inlined_call_operand.vmem [shape: bf16[2,4,8,8], index: 1, kind: input, shape index: {}]   ;;  %s1936_s2 = inlined_call_operand.vmem [shape: bf16[2,4,8,8], index: 2, kind: input, shape index: {}]   ;;  %s1937_s3 = inlined_call_operand.vmem [shape: bf16[2,4,8,8], index: 3, kind: output, shape index: {}]  }
   0x1   :  { %s1756_s14 = smov 0  }
   0x2 LB: > { %s32_s15 = sadd.s32 1, %s1722_s13  ;;  %p1555_p0 = scmp.ge.s32.totalorder %s1726_s14, 1  ;;  %s1726_s14 = sphi %s1756_s14, %s13_s14   ;;  %s1722_s13 = sphi %s1754_s13, %s1939_s13   ;;  %s1718_s12 = sphi %s1752_s12, %s1938_s12  }
   0x3   : > { %p34_p1 = scmp.ge.s32.totalorder %s32_s15, 2  ;;  %p209_p2 = scmp.lt.s32.totalorder %s1726_s14, 3 }
   0x5   : > { %s1941_s15 = smov (%p34_p1, %s32_s15), 0  ;;  %p210_p3 = pnand %p1555_p0, %p209_p2 }
   0x6   : > { %p259_p4 = scmp.lt.s32.totalorder (!%p210_p3), %s1718_s12, 1  ;;  %vm313_vm0 = vcmask (!%p210_p3), 64512   ;;  %v1728_v0 = vmov (!%p210_p3), 0.0   ;;  %vm1729_vm1 = vmmov (!%p210_p3), 0   ;;  %vm304_vm2 = vcmask (!%p210_p3), 7168  }
   0x7   : > { %213 = sbr.rel (%p210_p3) target bundleno = 838 (0x346), region = 32  ;;  %1602 = vmatprep.subr.bf16.mxu0 (!%p210_p3), %v1728_v0  ;;  %314 = vst.msk [vmem:[#allocation4] sm:$0xff] (!%p210_p3), %vm313_vm0, %v1728_v0  ;;  %315 = vst.msk [vmem:[#allocation4 + $0x8] sm:$0xff] (!%p210_p3), %vm313_vm0, %v1728_v0  ;;  %1608 = vmatprep.subr.bf16.mxu1 (!%p210_p3), %v1728_v0  ;;  %v1730_v13 = vmov (!%p210_p3), -inf   ;;  %v1050_v14 = vlaneseq (!%p210_p3)  ;;  %v1731_v45 = vmov (!%p210_p3), 0   ;;  %vm1187_vm4 = vcmask (!%p210_p3), 1043456  }
   0x8   : > { %316 = vst.msk [vmem:[#allocation4 + $0x10] sm:$0xff] (!%p210_p3), %vm313_vm0, %v1728_v0  ;;  %317 = vst.msk [vmem:[#allocation4 + $0x18] sm:$0xff] (!%p210_p3), %vm313_vm0, %v1728_v0  ;;  %1604 = vmatprep.mubr.msk.bf16.mxu0 (!%p210_p3), %vm1729_vm1, %v1728_v0  ;;  %1610 = vmatprep.mubr.msk.bf16.mxu1 (!%p210_p3), %vm1729_vm1, %v1728_v0  ;;  %vm1424_vm5 = vcmask (!%p210_p3), 60416  }
   0x9   : > { %305 = vst.msk [vmem:[#allocation2] sm:$0xff] (!%p210_p3), %vm304_vm2, %v1730_v13  ;;  %306 = vst.msk [vmem:[#allocation2 + $0x8] sm:$0xff] (!%p210_p3), %vm304_vm2, %v1730_v13  ;;  %v1051_v15 = vshrl.u32 (!%p210_p3), %v1050_v14, 7  ;;  %v1053_v16 = vand.u32 (!%p210_p3), 127, %v1050_v14  ;;  %1678 = vset.pattern.permute.xlu0 (!%p210_p3), %v1731_v45  ;;  %1679 = vset.pattern.permute.xlu1 (!%p210_p3), %v1731_v45 }
   0xa   : > { %307 = vst.msk [vmem:[#allocation2 + $0x10] sm:$0xff] (!%p210_p3), %vm304_vm2, %v1730_v13  ;;  %308 = vst.msk [vmem:[#allocation2 + $0x18] sm:$0xff] (!%p210_p3), %vm304_vm2, %v1730_v13 }
   0xb   : > { %309 = vst.msk [vmem:[#allocation3] sm:$0xff] (!%p210_p3), %vm304_vm2, %v1728_v0  ;;  %310 = vst.msk [vmem:[#allocation3 + $0x8] sm:$0xff] (!%p210_p3), %vm304_vm2, %v1728_v0  ;;  %vm1054_vm3 = vcmp.le.s32.totalorder (!%p210_p3), %v1053_v16, %v1051_v15 }
   0xc   : > { %311 = vst.msk [vmem:[#allocation3 + $0x10] sm:$0xff] (!%p210_p3), %vm304_vm2, %v1728_v0  ;;  %312 = vst.msk [vmem:[#allocation3 + $0x18] sm:$0xff] (!%p210_p3), %vm304_vm2, %v1728_v0 }
   0xe   : > { %s1943_s12 = smov (!%p259_p4, %s1718_s12), 1 }
   0xf   : > { %s1784_s16 = sshll.u32 %s1943_s12, 4 }
  0x10   : > { %s276_s19 = scalar_lea.vmem %s1935_s1, %s1784_s16  ;;  %s266_s22 = scalar_lea.vmem %s1934_s0, %s1784_s16  ;;  %v1840_v46 = vld [vmem:[#allocation2] sm:$0xff]  ;;  %v1845_v49 = vld [vmem:[#allocation2 + $0x8] sm:$0xff] }
  0x11   : > { %v853_v1 = vld [vmem:[%s276_s19] sm:$0xf]  ;;  %v854_v2 = vld [vmem:[%s276_s19 + $0x4] sm:$0xf]  ;;  %v855_v5 = vld [vmem:[%s276_s19 + $0x8] sm:$0xf]  ;;  %s288_s25 = scalar_lea.vmem %s1936_s2, %s1784_s16  ;;  %s298_s28 = scalar_lea.vmem %s1937_s3, %s1784_s16 }
  0x12   : > { %v866_v3 = vsel %vm313_vm0, %v853_v1, 0  ;;  %v912_v4 = vsel %vm313_vm0, %v854_v2, 0  ;;  %v856_v6 = vld [vmem:[%s276_s19 + $0xc] sm:$0xf]  ;;  %v849_v7 = vld [vmem:[%s266_s22] sm:$0xf] }
  0x13   : > { %1603 = vmatpush3.bf16.xpose.msra.mxu0 %v866_v3  ;;  %1609 = vmatpush3.bf16.xpose.msra.mxu1 %v912_v4  ;;  %v850_v8 = vld [vmem:[%s266_s22 + $0x4] sm:$0xf]  ;;  %v958_v9 = vsel %vm313_vm0, %v855_v5, 0  ;;  %v1004_v10 = vsel %vm313_vm0, %v856_v6, 0  ;;  %v851_v11 = vld [vmem:[%s266_s22 + $0x8] sm:$0xf] }
  0x14   : > { %1614 = vmatprep.subr.bf16.mxu0 %v1728_v0  ;;  %1620 = vmatprep.subr.bf16.mxu1 %v1728_v0  ;;  %v852_v12 = vld [vmem:[%s266_s22 + $0xc] sm:$0xf]  ;;  %v1855_v53 = vld [vmem:[#allocation2 + $0x10] sm:$0xff]  ;;  %v1865_v57 = vld [vmem:[#allocation2 + $0x18] sm:$0xff] }
  0x15   : > { %v857_v62 = vld [vmem:[%s288_s25] sm:$0xf]  ;;  %v858_v1 = vld [vmem:[%s288_s25 + $0x4] sm:$0xf]  ;;  %v859_v3 = vld [vmem:[%s288_s25 + $0x8] sm:$0xf] }
  0x16   : > { %v1189_v63 = vsel %vm1187_vm4, %v857_v62, 0  ;;  %v1235_v2 = vsel %vm1187_vm4, %v858_v1, 0  ;;  %v1281_v4 = vsel %vm1187_vm4, %v859_v3, 0  ;;  %v860_v5 = vld [vmem:[%s288_s25 + $0xc] sm:$0xf]  ;;  %v1125_v45 = vld [vmem:[#allocation3 + $0x10] sm:$0xff] }
  0x17   : > { %v1327_v6 = vsel %vm1187_vm4, %v860_v5, 0  ;;  %v1152_v62 = vld [vmem:[#allocation4] sm:$0xff] }
  0x1a   : > { %1605 = vmatmul.mubr.msk.bf16.vlgmr.msra.gmra.mrb[0].mxu0 %vm313_vm0, %v849_v7  ;;  %1611 = vmatmul.mubr.msk.bf16.vlgmr.msra.gmra.mrb[0].mxu1 %vm313_vm0, %v850_v8 }
  0x1b   : > { %1615 = vmatpush3.bf16.xpose.msra.mxu0 %v958_v9  ;;  %1621 = vmatpush3.bf16.xpose.msra.mxu1 %v1004_v10 }
  0x1c   : > { %1616 = vmatprep.mubr.msk.bf16.mxu0 %vm1729_vm1, %v1728_v0  ;;  %1622 = vmatprep.mubr.msk.bf16.mxu1 %vm1729_vm1, %v1728_v0 }
  0x1d   : > { %1626 = vmatprep.subr.bf16.mxu0 %v1728_v0  ;;  %1632 = vmatprep.subr.bf16.mxu1 %v1728_v0 }
  0x22   : > { %1617 = vmatmul.mubr.msk.bf16.vlgmr.msra.gmra.mrb[4].mxu0 %vm313_vm0, %v851_v11  ;;  %1623 = vmatmul.mubr.msk.bf16.vlgmr.msra.gmra.mrb[4].mxu1 %vm313_vm0, %v852_v12 }
  0x23   : > { %1628 = vmatprep.mubr.msk.bf16.mxu0 %vm1729_vm1, %v1728_v0  ;;  %1634 = vmatprep.mubr.msk.bf16.mxu1 %vm1729_vm1, %v1728_v0 }
  0x24   : > { %1627 = vmatpush3.bf16.msra.mxu0 %v1189_v63  ;;  %1633 = vmatpush3.bf16.msra.mxu1 %v1235_v2  ;;  %v1153_v2 = vld [vmem:[#allocation4 + $0x8] sm:$0xff] }
  0x25   : > { %1638 = vmatprep.subr.bf16.mxu0 %v1728_v0  ;;  %1644 = vmatprep.subr.bf16.mxu1 %v1728_v0 }
  0xed   : > { %v902_v17 = vpop.f32.mrb[0].mxu0  ;;  %v948_v18 = vpop.f32.mrb[0].mxu1 }
  0xee   : > { %v1046_v19 = vmul.f32 0.35355338, %v902_v17  ;;  %v1606_v20 = vpop.f32.mrb[1].mxu0  ;;  %v1047_v21 = vmul.f32 0.35355338, %v948_v18  ;;  %v1612_v22 = vpop.f32.mrb[1].mxu1 }
  0xef   : > { %v905_v23 = vpop.f32.mrb[2].mxu0  ;;  %v951_v24 = vpop.f32.mrb[2].mxu1 }
  0xf0   : > { %v1607_v25 = vpop.f32.mrb[3].mxu0  ;;  %v1613_v26 = vpop.f32.mrb[3].mxu1  ;;  %v1827_v27 = vsel %vm1054_vm3, %v1046_v19, -1e+30  ;;  %v1830_v28 = vsel %vm1054_vm3, %v1047_v21, -1e+30 }
  0xf1   : > { %v1063_v29 = vsel %vm313_vm0, %v1827_v27, -inf  ;;  %v1066_v30 = vsel %vm313_vm0, %v1830_v28, -inf }
  0xf2   : > { %1064 = vmax.xlane.f32.xlu0 %v1063_v29 }
  0xf5   : > { %v994_v31 = vpop.f32.mrb[4].mxu0  ;;  %v1040_v32 = vpop.f32.mrb[4].mxu1 }
  0xf6   : > { %v1048_v33 = vmul.f32 0.35355338, %v994_v31  ;;  %1067 = vmax.xlane.f32.xlu0 %v1066_v30  ;;  %v1618_v34 = vpop.f32.mrb[5].mxu0  ;;  %v1049_v35 = vmul.f32 0.35355338, %v1040_v32  ;;  %v1624_v36 = vpop.f32.mrb[5].mxu1 }
  0xf7   : > { %v997_v37 = vpop.f32.mrb[6].mxu0  ;;  %v1043_v38 = vpop.f32.mrb[6].mxu1 }
  0xf8   : > { %v1619_v39 = vpop.f32.mrb[7].mxu0  ;;  %v1625_v40 = vpop.f32.mrb[7].mxu1  ;;  %v1057_v41 = vsel %vm1054_vm3, %v1048_v33, -1e+30  ;;  %v1058_v42 = vsel %vm1054_vm3, %v1049_v35, -1e+30 }
  0xf9   : > { %v1069_v43 = vsel %vm313_vm0, %v1057_v41, -inf  ;;  %v1072_v44 = vsel %vm313_vm0, %v1058_v42, -inf  ;;  %v1123_v38 = vld [vmem:[#allocation3] sm:$0xff] }
  0xfa   : > { %1070 = vmax.xlane.f32.xlu1 %v1069_v43 }
  0xfe   : > { %1073 = vmax.xlane.f32.xlu1 %v1072_v44 }
 0x17f   : > { %v1065_v47 = vpop.xlane.xlu0 %1064 }
 0x180   : > { %v1843_v48 = vmax.f32 %v1840_v46, %v1065_v47 }
 0x182   : > { %v1079_v50 = vsub.f32 %v1840_v46, %v1843_v48  ;;  %1377 = vst.msk [vmem:[#allocation2] sm:$0xff] %vm304_vm2, %v1843_v48  ;;  %1093 = vperm.xlu0 %1678, %v1843_v48  }
 0x183   : > { %v1068_v51 = vpop.xlane.xlu0 %1067 }
 0x184   : > { %v1853_v52 = vmax.f32 %v1845_v49, %v1068_v51 }
 0x186   : > { %v1080_v54 = vsub.f32 %v1845_v49, %v1853_v52  ;;  %1378 = vst.msk [vmem:[#allocation2 + $0x8] sm:$0xff] %vm304_vm2, %v1853_v52  ;;  %1098 = vperm.xlu1 %1679, %v1853_v52   ;;  %v1126_v49 = vld [vmem:[#allocation3 + $0x18] sm:$0xff] }
 0x187   : > { %v1071_v55 = vpop.xlane.xlu1 %1070 }
 0x188   : > { %v1863_v56 = vmax.f32 %v1855_v53, %v1071_v55  ;;  %v1085_v29 = vmul.f32 1.442695, %v1080_v54 }
 0x18a   : > { %v1081_v58 = vsub.f32 %v1855_v53, %v1863_v56  ;;  %1379 = vst.msk [vmem:[#allocation2 + $0x10] sm:$0xff] %vm304_vm2, %v1863_v56  ;;  %1103 = vperm.xlu1 %1679, %v1863_v56  }
 0x18b   : > { %v1074_v59 = vpop.xlane.xlu1 %1073 }
 0x18c   : > { %v1873_v60 = vmax.f32 %v1865_v57, %v1074_v59  ;;  %v1087_v32 = vmul.f32 1.442695, %v1081_v58 }
 0x18e   : > { %v1082_v61 = vsub.f32 %v1865_v57, %v1873_v60  ;;  %1380 = vst.msk [vmem:[#allocation2 + $0x18] sm:$0xff] %vm304_vm2, %v1873_v60  ;;  %1108 = vperm.xlu1 %1679, %v1873_v60  }
 0x190   : > { %v1089_v33 = vmul.f32 1.442695, %v1082_v61 }
 0x201   : > { %v1094_v7 = vpop.permute.xlu0 %1093 }
 0x202   : > { %v1111_v8 = vsub.f32 %v1827_v27, %v1094_v7 }
 0x204   : > { %v1115_v9 = vmul.f32 1.442695, %v1111_v8 }
 0x205   : > { %v1099_v10 = vpop.permute.xlu1 %1098 }
 0x206   : > { %1680 = vpow2.f32 %v1115_v9  ;;  %v1112_v11 = vsub.f32 %v1830_v28, %v1099_v10 }
 0x208   : > { %v1117_v12 = vmul.f32 1.442695, %v1112_v11  ;;  %v1154_v11 = vld [vmem:[#allocation4 + $0x10] sm:$0xff] }
 0x209   : > { %v1104_v13 = vpop.permute.xlu1 %1103 }
 0x20a   : > { %1682 = vpow2.f32 %v1117_v12  ;;  %v1113_v14 = vsub.f32 %v1057_v41, %v1104_v13  ;;  %v1124_v41 = vld [vmem:[#allocation3 + $0x8] sm:$0xff] }
 0x20c   : > { %v1119_v15 = vmul.f32 1.442695, %v1113_v14 }
 0x20d   : > { %v1109_v16 = vpop.permute.xlu1 %1108 }
 0x20e   : > { %1684 = vpow2.f32 %v1119_v15  ;;  %v1114_v17 = vsub.f32 %v1058_v42, %v1109_v16 }
 0x210   : > { %v1681_v18 = vpop.eup %1680  ;;  %v1121_v19 = vmul.f32 1.442695, %v1114_v17 }
 0x211   : > { %v1131_v20 = vsel %vm313_vm0, %v1681_v18, 0.0  ;;  %v1180_v21 = vpack.c.bf16 %v1681_v18, %v1681_v18  ;;  %v1155_v18 = vld [vmem:[#allocation4 + $0x18] sm:$0xff] }
 0x212   : > { %1686 = vpow2.f32 %v1121_v19  ;;  %1132 = vadd.xlane.f32.xlu1 %v1131_v20 }
 0x213   : > { %1629 = vmatmul.mubr.msk.bf16.vlgmr.msra.gmra.mrb[8].mxu0 %vm313_vm0, %v1180_v21  ;;  %1688 = vpow2.f32 %v1085_v29 }
 0x214   : > { %v1683_v22 = vpop.eup %1682  ;;  %1639 = vmatpush3.bf16.msra.mxu0 %v1281_v4  ;;  %1640 = vmatprep.mubr.msk.bf16.mxu0 %vm1729_vm1, %v1728_v0 }
 0x215   : > { %v1134_v23 = vsel %vm313_vm0, %v1683_v22, 0.0  ;;  %v1181_v24 = vpack.c.bf16 %v1683_v22, %v1683_v22 }
 0x216   : > { %1135 = vadd.xlane.f32.xlu0 %v1134_v23 }
 0x217   : > { %1635 = vmatmul.mubr.msk.bf16.vlgmr.msra.gmra.mrb[8].mxu1 %vm313_vm0, %v1181_v24 }
 0x218   : > { %v1685_v25 = vpop.eup %1684  ;;  %1645 = vmatpush3.bf16.msra.mxu1 %v1327_v6  ;;  %1646 = vmatprep.mubr.msk.bf16.mxu1 %vm1729_vm1, %v1728_v0  ;;  %v1083_v0 = vmul.f32 1.442695, %v1079_v50 }
 0x219   : > { %v1137_v26 = vsel %vm313_vm0, %v1685_v25, 0.0  ;;  %v1182_v27 = vpack.c.bf16 %v1685_v25, %v1685_v25 }
 0x21a   : > { %1138 = vadd.xlane.f32.xlu1 %v1137_v26  ;;  %1690 = vpow2.f32 %v1083_v0 }
 0x21b   : > { %1641 = vmatmul.mubr.msk.bf16.vlgmr.msra.gmra.mrb[12].mxu0 %vm313_vm0, %v1182_v27  ;;  %1692 = vpow2.f32 %v1087_v32 }
 0x21c   : > { %v1687_v28 = vpop.eup %1686  ;;  %1694 = vpow2.f32 %v1089_v33 }
 0x21d   : > { %v1140_v30 = vsel %vm313_vm0, %v1687_v28, 0.0  ;;  %v1183_v31 = vpack.c.bf16 %v1687_v28, %v1687_v28  ;;  %v1689_v34 = vpop.eup %1688 }
 0x21e   : > { %1141 = vadd.xlane.f32.xlu1 %v1140_v30  ;;  %v1128_v43 = vmul.f32 %v1689_v34, %v1124_v41 }
 0x21f   : > { %1647 = vmatmul.mubr.msk.bf16.vlgmr.msra.gmra.mrb[12].mxu1 %vm313_vm0, %v1183_v31 }
 0x224   : > { %v1691_v35 = vpop.eup %1690 }
 0x225   : > { %v1693_v36 = vpop.eup %1692  ;;  %v1127_v39 = vmul.f32 %v1691_v35, %v1123_v38 }
 0x226   : > { %v1695_v37 = vpop.eup %1694  ;;  %v1129_v47 = vmul.f32 %v1693_v36, %v1125_v45 }
 0x227   : > { %v1130_v52 = vmul.f32 %v1695_v37, %v1126_v49 }
 0x22c   : > { %1163 = vperm.xlu0 %1678, %v1689_v34  }
 0x22f   : > { %1158 = vperm.xlu1 %1679, %v1691_v35  }
 0x233   : > { %1168 = vperm.xlu1 %1679, %v1693_v36  }
 0x237   : > { %1173 = vperm.xlu1 %1679, %v1695_v37  }
 0x29f   : > { %v1133_v40 = vpop.xlane.xlu1 %1132 }
 0x2a0   : > { %v1143_v42 = vadd.f32 %v1133_v40, %v1127_v39 }
 0x2a2   : > { %1148 = vst.msk [vmem:[#allocation3] sm:$0xff] %vm304_vm2, %v1143_v42 }
 0x2a3   : > { %v1136_v44 = vpop.xlane.xlu0 %1135 }
 0x2a4   : > { %v1144_v46 = vadd.f32 %v1136_v44, %v1128_v43 }
 0x2a6   : > { %1149 = vst.msk [vmem:[#allocation3 + $0x8] sm:$0xff] %vm304_vm2, %v1144_v46 }
 0x2a7   : > { %v1139_v48 = vpop.xlane.xlu1 %1138 }
 0x2a8   : > { %v1145_v50 = vadd.f32 %v1139_v48, %v1129_v47 }
 0x2a9   : > { %v1388_v51 = vld [vmem:[#allocation3] sm:$0xff] }
 0x2aa   : > { %1150 = vst.msk [vmem:[#allocation3 + $0x10] sm:$0xff] %vm304_vm2, %v1145_v50  ;;  %1696 = vrcp.f32 %v1388_v51 }
 0x2ab   : > { %v1142_v53 = vpop.xlane.xlu1 %1141  ;;  %v1164_v3 = vpop.permute.xlu0 %1163 }
 0x2ac   : > { %v1146_v54 = vadd.f32 %v1142_v53, %v1130_v52  ;;  %v1177_v9 = vmul.f32 %v1164_v3, %v1153_v2 }
 0x2ad   : > { %v1389_v55 = vld [vmem:[#allocation3 + $0x8] sm:$0xff] }
 0x2ae   : > { %1151 = vst.msk [vmem:[#allocation3 + $0x18] sm:$0xff] %vm304_vm2, %v1146_v54  ;;  %1698 = vrcp.f32 %v1389_v55 }
 0x2af   : > { %v1159_v63 = vpop.permute.xlu1 %1158 }
 0x2b0   : > { %v1176_v1 = vmul.f32 %v1159_v63, %v1152_v62 }
 0x2b1   : > { %v1390_v56 = vld [vmem:[#allocation3 + $0x10] sm:$0xff] }
 0x2b2   : > { %1700 = vrcp.f32 %v1390_v56 }
 0x2b3   : > { %v1169_v7 = vpop.permute.xlu1 %1168 }
 0x2b4   : > { %v1697_v57 = vpop.eup %1696  ;;  %v1178_v16 = vmul.f32 %v1169_v7, %v1154_v11 }
 0x2b5   : > { %1398 = vperm.xlu1 %1679, %v1697_v57   ;;  %v1391_v58 = vld [vmem:[#allocation3 + $0x18] sm:$0xff] }
 0x2b6   : > { %1702 = vrcp.f32 %v1391_v58 }
 0x2b7   : > { %v1174_v19 = vpop.permute.xlu1 %1173 }
 0x2b8   : > { %v1699_v59 = vpop.eup %1698  ;;  %v1179_v24 = vmul.f32 %v1174_v19, %v1155_v18 }
 0x2b9   : > { %1403 = vperm.xlu0 %1678, %v1699_v59  }
 0x2bc   : > { %v1701_v60 = vpop.eup %1700 }
 0x2bd   : > { %1408 = vperm.xlu1 %1679, %v1701_v60  }
 0x2c0   : > { %v1703_v61 = vpop.eup %1702 }
 0x2c1   : > { %1413 = vperm.xlu0 %1678, %v1703_v61  }
 0x2e6   : > { %v1225_v4 = vpop.f32.mrb[8].mxu0 }
 0x2e7   : > { %v1369_v5 = vadd.f32 %v1225_v4, %v1176_v1  ;;  %v1630_v6 = vpop.f32.mrb[9].mxu0 }
 0x2e8   : > { %v1228_v8 = vpop.f32.mrb[10].mxu0 }
 0x2e9   : > { %1373 = vst.msk [vmem:[#allocation4] sm:$0xff] %vm313_vm0, %v1369_v5  ;;  %v1631_v10 = vpop.f32.mrb[11].mxu0 }
 0x2ea   : > { %v1271_v12 = vpop.f32.mrb[8].mxu1 }
 0x2eb   : > { %v1370_v13 = vadd.f32 %v1271_v12, %v1177_v9  ;;  %v1636_v14 = vpop.f32.mrb[9].mxu1 }
 0x2ec   : > { %v1274_v15 = vpop.f32.mrb[10].mxu1 }
 0x2ed   : > { %1374 = vst.msk [vmem:[#allocation4 + $0x8] sm:$0xff] %vm313_vm0, %v1370_v13  ;;  %v1637_v17 = vpop.f32.mrb[11].mxu1 }
 0x2ee   : > { %v1317_v20 = vpop.f32.mrb[12].mxu0 }
 0x2ef   : > { %v1371_v21 = vadd.f32 %v1317_v20, %v1178_v16  ;;  %v1642_v22 = vpop.f32.mrb[13].mxu0 }
 0x2f0   : > { %v1320_v23 = vpop.f32.mrb[14].mxu0  ;;  %v1384_v0 = vld [vmem:[#allocation4] sm:$0xff] }
 0x2f1   : > { %1375 = vst.msk [vmem:[#allocation4 + $0x10] sm:$0xff] %vm313_vm0, %v1371_v21  ;;  %v1643_v25 = vpop.f32.mrb[15].mxu0 }
 0x2f2   : > { %v1363_v26 = vpop.f32.mrb[12].mxu1 }
 0x2f3   : > { %v1372_v27 = vadd.f32 %v1363_v26, %v1179_v24  ;;  %v1648_v28 = vpop.f32.mrb[13].mxu1 }
 0x2f4   : > { %v1366_v29 = vpop.f32.mrb[14].mxu1  ;;  %v1385_v34 = vld [vmem:[#allocation4 + $0x8] sm:$0xff] }
 0x2f5   : > { %1376 = vst.msk [vmem:[#allocation4 + $0x18] sm:$0xff] %vm313_vm0, %v1372_v27  ;;  %v1649_v30 = vpop.f32.mrb[15].mxu1 }
 0x2f8   : > { %v1386_v39 = vld [vmem:[#allocation4 + $0x10] sm:$0xff] }
 0x2fc   : > { %v1387_v43 = vld [vmem:[#allocation4 + $0x18] sm:$0xff] }
 0x334   : > { %v1399_v31 = vpop.permute.xlu1 %1398 }
 0x335   : > { %v1416_v32 = vmul.f32 %v1399_v31, %v1384_v0 }
 0x337   : > { %v1420_v33 = vpack.c.bf16 %v1416_v32, %v1416_v32 }
 0x338   : > { %v1404_v35 = vpop.permute.xlu0 %1403 }
 0x339   : > { %1425 = vst.msk [vmem:[%s298_s28] sm:$0xf] %vm1424_vm5, %v1420_v33  ;;  %v1417_v36 = vmul.f32 %v1404_v35, %v1385_v34 }
 0x33b   : > { %v1421_v37 = vpack.c.bf16 %v1417_v36, %v1417_v36 }
 0x33c   : > { %v1409_v38 = vpop.permute.xlu1 %1408 }
 0x33d   : > { %1426 = vst.msk [vmem:[%s298_s28 + $0x4] sm:$0xf] %vm1424_vm5, %v1421_v37  ;;  %v1418_v40 = vmul.f32 %v1409_v38, %v1386_v39 }
 0x33f   : > { %v1422_v41 = vpack.c.bf16 %v1418_v40, %v1418_v40 }
 0x340   : > { %v1414_v42 = vpop.permute.xlu0 %1413 }
 0x341   : > { %1427 = vst.msk [vmem:[%s298_s28 + $0x8] sm:$0xf] %vm1424_vm5, %v1422_v41  ;;  %v1419_v44 = vmul.f32 %v1414_v42, %v1387_v43 }
 0x343   : > { %v1423_v45 = vpack.c.bf16 %v1419_v44, %v1419_v44 }
 0x345   : > { %1428 = vst.msk [vmem:[%s298_s28 + $0xc] sm:$0xf] %vm1424_vm5, %v1423_v45 }
 0x346 PF: > { %s13_s14 = sadd.s32 1, %s1726_s14   ;;  %s1938_s12 = smov %s1722_s13 }
 0x347   : > { %p10_p5 = scmp.ge.s32.totalorder %s13_s14, 4   ;;  %s1939_s13 = smov %s1941_s15 }
 0x349   :  { %12 = sbr.rel (!%p10_p5) target bundleno = 2 (0x2), region = 84 }

// kernel: gpt_forward.15
= control target key start
LH: loop header
LB: loop body
LE: loop exit
PB: predicated region body
PF: predicated region fallthrough
CT: control target
= control target key end

     0   :  { %v186_v0 = vmov 0.0   ;;  %vm187_vm0 = vmmov 0   ;;  %vm130_vm1 = vcmask 261120   ;;  %s247_s1 = inlined_call_operand.vmem [shape: bf16[128,32], index: 1, kind: input, shape index: {}]   ;;  %s248_s0 = inlined_call_operand.vmem [shape: bf16[16,128], index: 0, kind: input, shape index: {}]   ;;  %s249_s2 = inlined_call_operand.vmem [shape: f32[16,32], index: 2, kind: input, shape index: {}]   ;;  %s250_s3 = inlined_call_operand.vmem [shape: f32[16,32], index: 3, kind: output, shape index: {}]  }
   0x1   :  { %155 = vmatprep.subr.bf16.mxu0 %v186_v0  ;;  %v177_v1 = vld [vmem:[%s247_s1] sm:$0xff]   ;;  %171 = vmatprep.mubr.msk.bf16.mxu0 %vm187_vm0, %v186_v0  ;;  %v178_v2 = vld [vmem:[%s247_s1 + $0x8] sm:$0xff]   ;;  %v179_v3 = vld [vmem:[%s247_s1 + $0x10] sm:$0xff]  }
   0x2   :  { %156 = vmatpush3.bf16.msra.mxu0 %v177_v1  ;;  %v180_v4 = vld [vmem:[%s247_s1 + $0x18] sm:$0xff]   ;;  %v181_v5 = vld [vmem:[%s247_s1 + $0x20] sm:$0xff]   ;;  %v182_v6 = vld [vmem:[%s247_s1 + $0x28] sm:$0xff]  }
   0x3   :  { %157 = vmatprep.subr.bf16.mxu0 %v186_v0  ;;  %v183_v7 = vld [vmem:[%s247_s1 + $0x30] sm:$0xff]   ;;  %v184_v8 = vld [vmem:[%s247_s1 + $0x38] sm:$0xff]   ;;  %v185_v9 = vld [vmem:[%s248_s0] sm:$0xff]  }
   0x4   :  { %v33_v10 = vld [vmem:[%s249_s2] sm:$0xff]  ;;  %v34_v12 = vld [vmem:[%s249_s2 + $0x8] sm:$0xff] }
   0x6   :  { %158 = vmatpush3.bf16.msra.mxu0 %v178_v2 }
   0x7   :  { %159 = vmatprep.subr.bf16.mxu0 %v186_v0 }
   0xa   :  { %160 = vmatpush3.bf16.msra.mxu0 %v179_v3 }
   0xb   :  { %161 = vmatprep.subr.bf16.mxu0 %v186_v0 }
   0xe   :  { %162 = vmatpush3.bf16.msra.mxu0 %v180_v4 }
   0xf   :  { %163 = vmatprep.subr.bf16.mxu0 %v186_v0 }
  0x12   :  { %164 = vmatpush3.bf16.msra.mxu0 %v181_v5 }
  0x13   :  { %165 = vmatprep.subr.bf16.mxu0 %v186_v0 }
  0x16   :  { %166 = vmatpush3.bf16.msra.mxu0 %v182_v6 }
  0x17   :  { %167 = vmatprep.subr.bf16.mxu0 %v186_v0 }
  0x1a   :  { %168 = vmatpush3.bf16.msra.mxu0 %v183_v7 }
  0x1b   :  { %169 = vmatprep.subr.bf16.mxu0 %v186_v0 }
  0x1e   :  { %170 = vmatpush3.bf16.msra.mxu0 %v184_v8 }
  0x21   :  { %172 = vmatmul.mubr.bf16.vlgmr.msra.gmra.mrb[0].mxu0 %v185_v9 }
  0xf4   :  { %v123_v11 = vpop.f32.mrb[0].mxu0 }
  0xf5   :  { %v124_v13 = vadd.f32 %v123_v11, %v33_v10  ;;  %v173_v14 = vpop.f32.mrb[1].mxu0 }
  0xf6   :  { %v126_v15 = vpop.f32.mrb[2].mxu0 }
  0xf7   :  { %131 = vst.msk [vmem:[%s250_s3] sm:$0xff] %vm130_vm1, %v124_v13  ;;  %v127_v16 = vadd.f32 %v126_v15, %v34_v12  ;;  %v174_v17 = vpop.f32.mrb[3].mxu0 }
  0xf9   :  { %132 = vst.msk [vmem:[%s250_s3 + $0x8] sm:$0xff] %vm130_vm1, %v127_v16 }

// kernel: gpt_forward.21
= control target key start
LH: loop header
LB: loop body
LE: loop exit
PB: predicated region body
PF: predicated region fallthrough
CT: control target
= control target key end

     0   :  { %vm20_vm0 = vcmask 261120   ;;  %s248_s0 = inlined_call_operand.vmem [shape: f32[16,32], index: 0, kind: input, shape index: {}]   ;;  %s249_s1 = inlined_call_operand.vmem [shape: f32[1,32], index: 1, kind: input, shape index: {}]   ;;  %s250_s2 = inlined_call_operand.vmem [shape: bf16[32,64], index: 2, kind: input, shape index: {}]   ;;  %s251_s3 = inlined_call_operand.hbm [shape: f32[16,64], index: 3, kind: output, shape index: {}]  }
   0x1   :  { %v16_v0 = vld [vmem:[%s248_s0] sm:$0xff]  ;;  %v17_v1 = vld [vmem:[%s248_s0 + $0x8] sm:$0xff] }
   0x2   :  { %v18_v2 = vmul.f32 %v16_v0, %v16_v0  ;;  %v19_v3 = vmul.f32 %v17_v1, %v17_v1 }
   0x3   :  { %8 = vsyncpa [#allocation3], 0  ;;  %v159_v6 = vld [vmem:[%s250_s2] sm:$0xff]   ;;  %v193_v7 = vmov 0.0   ;;  %vm194_vm1 = vmmov 0   ;;  %v160_v8 = vld [vmem:[%s250_s2 + $0x8] sm:$0xff]  }
   0x4   :  { %v21_v4 = vsel %vm20_vm0, %v18_v2, 0.0  ;;  %v24_v5 = vsel %vm20_vm0, %v19_v3, 0.0  ;;  %146 = vmatprep.subr.bf16.mxu0 %v193_v7  ;;  %150 = vmatprep.mubr.msk.bf16.mxu0 %vm194_vm1, %v193_v7  ;;  %v139_v25 = vld [vmem:[%s249_s1] ss:$0 sm:$0xff]  ;;  %s195_s20 = smov [#allocation2]   ;;  %vm120_vm6 = vcmask 523264  }
   0x5   :  { %22 = vadd.xlane.f32.xlu0 %v21_v4  ;;  %147 = vmatpush3.bf16.msra.mxu0 %v159_v6  ;;  %v51_v26 = vmul.f32 %v139_v25, %v16_v0  ;;  %v52_v27 = vmul.f32 %v139_v25, %v17_v1  ;;  %s128_s21 = sshll.u32 %s195_s20, 4  ;;  %s129_s21 = int_to_ptr.vmem [resolvable:$true] %s128_s21 }
   0x6   :  { %148 = vmatprep.subr.bf16.mxu0 %v193_v7  ;;  %s169_s1 = scalar_lea.vmem %s129_s21, 256  ;;  %p174_p1 = scmp.lt.s32.totalorder %s129_s21, %s129_s21 }
   0x7   :  { %p170_p0 = scmp.ne.s32.totalorder %s129_s21, %s169_s1  ;;  %p175_p2 = scmp.lt.s32.totalorder %s169_s1, %s169_s1 }
   0x9   :  { %25 = vadd.xlane.f32.xlu0 %v24_v5  ;;  %149 = vmatpush3.bf16.msra.mxu0 %v160_v8  ;;  %p176_p3 = por %p175_p2, %p174_p1 }
   0xb   :  { %p177_p4 = pnand %p176_p3, %p170_p0 }
  0x92   :  { %v23_v9 = vpop.xlane.xlu0 %22 }
  0x93   :  { %v28_v10 = vmul.f32 0.03125, %v23_v9 }
  0x95   :  { %161 = vrsqrt.f32 %v28_v10  ;;  %vm32_vm2 = vcmp.eq.f32.partialorder %v28_v10, inf  ;;  %v35_v15 = vand.u32 2147483648, %v28_v10  ;;  %vm34_vm3 = vcmp.eq.f32.partialorder %v28_v10, 0.0 }
  0x96   :  { %v26_v11 = vpop.xlane.xlu0 %25 }
  0x97   :  { %v29_v12 = vmul.f32 0.03125, %v26_v11 }
  0x99   :  { %163 = vrsqrt.f32 %v29_v12  ;;  %vm39_vm4 = vcmp.eq.f32.partialorder %v29_v12, inf  ;;  %v42_v21 = vand.u32 2147483648, %v29_v12  ;;  %vm41_vm5 = vcmp.eq.f32.partialorder %v29_v12, 0.0 }
  0x9f   :  { %v162_v13 = vpop.eup %161 }
  0xa0   :  { %v31_v14 = vmul.f32 %v162_v13, %v28_v10 }
  0xa2   :  { %v33_v16 = vsel %vm32_vm2, %v28_v10, %v31_v14 }
  0xa3   :  { %v164_v17 = vpop.eup %163  ;;  %v36_v18 = vsel %vm34_vm3, %v35_v15, %v33_v16 }
  0xa4   :  { %v38_v19 = vmul.f32 %v164_v17, %v29_v12  ;;  %v53_v20 = vadd.f32 1e-06, %v36_v18 }
  0xa6   :  { %v40_v22 = vsel %vm39_vm4, %v29_v12, %v38_v19  ;;  %165 = vrcp.f32 %v53_v20 }
  0xa7   :  { %v43_v23 = vsel %vm41_vm5, %v42_v21, %v40_v22 }
  0xa8   :  { %v54_v24 = vadd.f32 1e-06, %v43_v23 }
  0xaa   :  { %167 = vrcp.f32 %v54_v24 }
  0xb0   :  { %v166_v28 = vpop.eup %165 }
  0xb1   :  { %v56_v30 = vmul.f32 %v166_v28, %v51_v26 }
  0xb4   :  { %v168_v29 = vpop.eup %167 }
  0xb5   :  { %v58_v31 = vmul.f32 %v168_v29, %v52_v27 }
  0xb7   :  { %v59_v32 = vpack.c.bf16 %v58_v31, %v56_v30 }
  0xb9   :  { %151 = vmatmul.mubr.msk.bf16.vlgmr.msra.gmra.mrb[0].mxu0 %vm20_vm0, %v59_v32 }
 0x18c   :  { %v113_v33 = vpop.f32.mrb[0].mxu0 }
 0x18d   :  { %121 = vst.msk [vmem:[#allocation2] sm:$0xff] %vm120_vm6, %v113_v33  ;;  %v152_v34 = vpop.f32.mrb[1].mxu0 }
 0x18e   :  { %v116_v35 = vpop.f32.mrb[2].mxu0 }
 0x18f   :  { %122 = vst.msk [vmem:[#allocation2 + $0x8] sm:$0xff] %vm120_vm6, %v116_v35  ;;  %v153_v36 = vpop.f32.mrb[3].mxu0 }
 0x190   :  { %180 = shalt.err (!%p177_p4)
}
 0x191   :  { %s181_s24 = scalar_lea.hbm %s251_s3, 256 }
 0x192   :  { %p182_p5 = scmp.ne.s32.totalorder %s251_s3, %s181_s24  ;;  %p185_p6 = scmp.lt.u32.totalorder %s181_s24, %s251_s3 }
 0x194   :  { %p187_p7 = pnand %p185_p6, %p182_p5 }
 0x196   :  { %190 = shalt.err (!%p187_p7)
}
 0x197   :  { %s196_s29 = smov 128   ;;  %s197_s30 = smov 8  }
 0x198   :  { %134 = dma.vmem_to_hbm [thread:$0]  %s129_s21, 256, %s251_s3, [#allocation3], %s196_s29, %s196_s29, %s197_s30  }
 0x199   :  { %191 = dma.done.wait [#allocation3], 256  }
 0x19a   :  { %192 = vsyncadd [#allocation3], 4294967040 }
 0x19b   :  { %138 = vsyncpa [#allocation3], 1 }

</bundles_post_ra>
